<compile_context>
chip_gen: v7x
topology: tpu7x:2x2x1
jax: 0.10.0
libtpu: 0.0.40
codegen_flags: <defaults>
</compile_context>

<pallas_src>
import functools

import jax
import jax.numpy as jnp
from jax.experimental import pallas as pl
from jax.experimental.pallas import tpu as pltpu


def _cnn_kernel(xph_ref, mask_ref, blob_ref, w2_ref, out_ref, *, C1, C2, N2):
    # ---------- Conv1d(1, C1, k=2, stride=2, pad=6) + ReLU + MaxPool1d(2) ----------
    # Wrapper supplies 4 de-interleaved input phases, already embedded in S2-wide
    # per-batch lane segments at offset 6 (the conv2 left pad), plus a validity mask:
    #   phase k, lane (b*S2 + 6 + p)  ==  xpad1[b, 4*p + k]   for p < L1P, 0 elsewhere.
    # conv1 output at t=2p uses phases (0,1); at t=2p+1 uses phases (2,3);
    # MaxPool1d(2) is their max and ReLU commutes with max.  The mask multiply zeroes
    # the conv2 pad lanes, so conv2's padding=6 is materialized for free.
    xph = xph_ref[0]                                   # (4, N2)
    mask = mask_ref[...]                               # (1, N2)
    w1_0 = blob_ref[0:C1, 0:1]                         # (C1, 1) tap-0 weight
    w1_1 = blob_ref[0:C1, 1:2]                         # (C1, 1) tap-1 weight
    b1 = blob_ref[0:C1, 2:3]                           # (C1, 1) bias
    y_even = w1_0 * xph[0:1, :] + w1_1 * xph[1:2, :] + b1
    y_odd = w1_0 * xph[2:3, :] + w1_1 * xph[3:4, :] + b1
    p1 = jnp.maximum(jnp.maximum(y_even, y_odd), 0.0) * mask         # (C1, N2)

    # ---------- Conv1d(C1, C2, k=2, stride=1, pad=6): VPU broadcast-MACs ----------
    # tap-0 operand is p1 itself; tap-1 operand is the next lane via one whole-slab
    # roll (wrapped lanes carry pad zeros / feed only discarded positions).
    p1s = pltpu.roll(p1, N2 - 1, 1)                    # p1s[:, i] = p1[:, (i+1) % N2]
    b2 = w2_ref[0:C2, 2 * C1:2 * C1 + 1]               # (C2, 1) bias
    y2 = w2_ref[0:C2, 0:1] * p1[0:1, :] + b2           # (C2, N2)
    for r in range(1, C1):                             # static, 2*C1-1 more MAC terms
        y2 = y2 + w2_ref[0:C2, r:r + 1] * p1[r:r + 1, :]
    for r in range(C1):
        y2 = y2 + w2_ref[0:C2, C1 + r:C1 + r + 1] * p1s[r:r + 1, :]

    # ---------- ReLU + MaxPool1d(4): log-step sliding max (XLU rolls) ----------
    # The stride-4 decimation is done by the wrapper, so no lane gather here; lanes
    # wrapped across segment boundaries only feed pool positions that are discarded.
    m2 = jnp.maximum(y2, pltpu.roll(y2, N2 - 1, 1))    # max over {t, t+1}
    m4 = jnp.maximum(m2, pltpu.roll(m2, N2 - 2, 1))    # max over {t, t+1, t+2, t+3}
    out_ref[...] = jnp.maximum(m4, 0.0).astype(out_ref.dtype)


@functools.partial(jax.jit, static_argnums=(2,))
def cnn_forward(x, params, output_size):
    """Forward pass of `Cnn`. x: (B, L) float32; params hold PyTorch-layout weights."""
    x = jnp.asarray(x, jnp.float32)
    B, L = x.shape
    C1 = params["conv1_w"].shape[0]
    C2 = params["conv2_w"].shape[0]
    OUT = int(output_size)

    # PyTorch shape arithmetic.
    L1 = (L + 2 * 6 - 2) // 2 + 1        # conv1 output length (stride 2)
    L1P = L1 // 2                        # after MaxPool1d(2)
    L2 = L1P + 2 * 6 - 2 + 1             # conv2 output length (stride 1)
    L2P = L2 // 4                        # after MaxPool1d(4)
    flat_dim = C2 * L2P
    assert params["fc_w"].shape == (OUT, flat_dim)

    # Per-batch lane segment: conv2 positions rounded up to whole pool-4 groups.
    S2 = 4 * (-(-L2 // 4))

    # Batch tiling: big tiles -> wide lane slabs + few grid steps (per review).
    # Keep B_TILE a multiple of 32 so N2 = B_TILE*S2 is a multiple of 128 lanes.
    B_TILE = 128 if B <= 256 else 256
    max_tile = max(32, (65536 // max(S2, 1)) // 32 * 32)   # VMEM guard for huge L
    B_TILE = min(B_TILE, max_tile)
    Bp = -(-B // B_TILE) * B_TILE
    NB = Bp // B_TILE
    N2 = B_TILE * S2

    # ---- Input phase layout (free XLA-side work, kept out of the kernel) ----
    # De-interleave the conv1 stride-2 taps AND the maxpool(2) pairing, then embed
    # each batch row into its S2-wide lane segment at offset 6 so the conv2 pad
    # zeros are already in place (no in-kernel scatter).
    xpad = jnp.pad(x, ((0, Bp - B), (6, 6)))[:, :4 * L1P]             # (Bp, 4*L1P)
    xph4 = xpad.reshape(Bp, L1P, 4).transpose(0, 2, 1)                # (Bp, 4, L1P)
    xseg = jnp.zeros((Bp, 4, S2), jnp.float32).at[:, :, 6:6 + L1P].set(xph4)
    xph = xseg.reshape(NB, B_TILE, 4, S2).transpose(0, 2, 1, 3).reshape(NB, 4, N2)

    # Validity mask: 1.0 at real conv1-output positions, 0.0 at conv2 pad lanes.
    mseg = jnp.zeros((S2,), jnp.float32).at[6:6 + L1P].set(1.0)
    mask = jnp.tile(mseg, (B_TILE,)).reshape(1, N2)

    # ---- Parameter packing (constant-index blocks, fetched once) ----
    w1 = jnp.asarray(params["conv1_w"], jnp.float32)[:, 0, :]         # (C1, 2)
    b1 = jnp.asarray(params["conv1_b"], jnp.float32)                  # (C1,)
    w2 = jnp.asarray(params["conv2_w"], jnp.float32)                  # (C2, C1, 2)
    b2 = jnp.asarray(params["conv2_b"], jnp.float32)                  # (C2,)
    fw = jnp.asarray(params["fc_w"], jnp.float32)                     # (OUT, flat_dim)
    fb = jnp.asarray(params["fc_b"], jnp.float32)                     # (OUT,)

    blob = jnp.stack([w1[:, 0], w1[:, 1], b1], axis=1)                # (C1, 3)
    w2aug = jnp.concatenate([w2[:, :, 0], w2[:, :, 1], b2[:, None]], axis=1)  # (C2, 2*C1+1)

    kernel = functools.partial(_cnn_kernel, C1=C1, C2=C2, N2=N2)

    pooled = pl.pallas_call(
        kernel,
        grid=(NB,),
        out_shape=jax.ShapeDtypeStruct((C2, NB * N2), jnp.float32),
        in_specs=[
            pl.BlockSpec((1, 4, N2), lambda g: (g, 0, 0)),            # input phases
            pl.BlockSpec((1, N2), lambda g: (0, 0)),                  # pad-validity mask
            pl.BlockSpec((C1, 3), lambda g: (0, 0)),                  # conv1 taps + bias
            pl.BlockSpec((C2, 2 * C1 + 1), lambda g: (0, 0)),         # conv2 taps + bias
        ],
        out_specs=pl.BlockSpec((C2, N2), lambda g: (0, g)),           # lane-dense slab
        compiler_params=pltpu.CompilerParams(
            dimension_semantics=("parallel",)),
    )(xph, mask, blob, w2aug)

    # ---- Stride-4 pool decimation + Flatten + Linear + Softmax (tiny; XLA) ----
    # TODO(synk): nn.Dropout is identity at inference; no RNG mask applied here.
    # TODO(synk): the PyTorch module builds a fresh nn.Linear inside forward(); we
    #             treat fc_w / fc_b as fixed parameters instead.
    pooled = pooled.reshape(C2, Bp, S2)[:, :B, 0:4 * L2P:4]           # (C2, B, L2P)
    flat = jnp.transpose(pooled, (1, 0, 2)).reshape(B, C2 * L2P)
    logits = flat @ fw.T + fb
    if OUT == 2:   # PyTorch module applies Softmax only when output_size == 2
        logits = jax.nn.softmax(logits, axis=1)
    return logits


def _reference_forward(x, params, output_size):
    """Independent pure-JAX reference (mirrors the PyTorch ops)."""
    xin = x[:, None, :].astype(jnp.float32)                           # (B, 1, L)
    y = jax.lax.conv_general_dilated(
        xin, params["conv1_w"], window_strides=(2,), padding=[(6, 6)],
        dimension_numbers=("NCH", "OIH", "NCH"))
    y = jnp.maximum(y + params["conv1_b"][None, :, None], 0.0)
    y = jax.lax.reduce_window(y, -jnp.inf, jax.lax.max, (1, 1, 2), (1, 1, 2), "VALID")
    y = jax.lax.conv_general_dilated(
        y, params["conv2_w"], window_strides=(1,), padding=[(6, 6)],
        dimension_numbers=("NCH", "OIH", "NCH"))
    y = jnp.maximum(y + params["conv2_b"][None, :, None], 0.0)
    y = jax.lax.reduce_window(y, -jnp.inf, jax.lax.max, (1, 1, 4), (1, 1, 4), "VALID")
    flat = y.reshape(y.shape[0], -1)
    logits = flat @ params["fc_w"].T + params["fc_b"]
    if output_size == 2:
        logits = jax.nn.softmax(logits, axis=1)
    return logits


if __name__ == "__main__":
    def _make_params(key, C1, C2, OUT, L):
        L1 = (L + 12 - 2) // 2 + 1
        L1P = L1 // 2
        L2 = L1P + 12 - 2 + 1
        L2P = L2 // 4
        flat_dim = C2 * L2P
        k1, k2, k3, k4, k5, k6 = jax.random.split(key, 6)
        return {
            "conv1_w": 0.3 * jax.random.normal(k1, (C1, 1, 2), jnp.float32),
            "conv1_b": 0.1 * jax.random.normal(k2, (C1,), jnp.float32),
            "conv2_w": 0.3 * jax.random.normal(k3, (C2, C1, 2), jnp.float32),
            "conv2_b": 0.1 * jax.random.normal(k4, (C2,), jnp.float32),
            "fc_w": 0.3 * jax.random.normal(k5, (OUT, flat_dim), jnp.float32),
            "fc_b": 0.1 * jax.random.normal(k6, (OUT,), jnp.float32),
        }

    key = jax.random.PRNGKey(0)
    C1, C2, OUT, L = 4, 8, 2, 16

    # Case 1: small batch (single grid step; batch padded to the 128-row tile).
    kx, kp = jax.random.split(key)
    B = 2
    x = jax.random.normal(kx, (B, L), jnp.float32)
    params = _make_params(kp, C1, C2, OUT, L)
    out = jax.block_until_ready(cnn_forward(x, params, OUT))
    ref = jax.block_until_ready(_reference_forward(x, params, OUT))
    assert out.shape == (B, OUT)
    assert jnp.allclose(out, ref, atol=2e-3, rtol=2e-3), (out, ref)

    # Case 2: batch > tile (exercises the parallel batch grid, NB = 2, batch padding).
    kx2, kp2 = jax.random.split(kp)
    B2 = 200
    x2 = jax.random.normal(kx2, (B2, L), jnp.float32)
    params2 = _make_params(kp2, C1, C2, OUT, L)
    out2 = jax.block_until_ready(cnn_forward(x2, params2, OUT))
    ref2 = jax.block_until_ready(_reference_forward(x2, params2, OUT))
    assert out2.shape == (B2, OUT)
    assert jnp.allclose(out2, ref2, atol=2e-3, rtol=2e-3), (out2, ref2)

    print("KERNEL_OK")
</pallas_src>

<mosaic_0001>
module attributes {stable_mosaic.version = 11 : i64} {
  func.func @_cnn_kernel(%arg0: i32, %arg1: memref<1x4x2560xf32, #tpu.memory_space<vmem>>, %arg2: memref<1x2560xf32, #tpu.memory_space<vmem>>, %arg3: memref<4x3xf32, #tpu.memory_space<vmem>>, %arg4: memref<8x9xf32, #tpu.memory_space<vmem>>, %arg5: memref<8x2560xf32, #tpu.memory_space<vmem>>) attributes {dimension_semantics = [#tpu.dimension_semantics<parallel>], iteration_bounds = array<i64: 1>, scalar_prefetch = 0 : i64, scratch_operands = 0 : i64, tpu.core_type = #tpu.core_type<tc>, window_params = [{transform_indices = @transform_0, window_bounds = array<i64: 1, 4, 2560>}, {pipeline_mode = #tpu.pipeline_mode<synchronous>, transform_indices = @transform_1, window_bounds = array<i64: 1, 2560>}, {pipeline_mode = #tpu.pipeline_mode<synchronous>, transform_indices = @transform_2, window_bounds = array<i64: 4, 3>}, {pipeline_mode = #tpu.pipeline_mode<synchronous>, transform_indices = @transform_3, window_bounds = array<i64: 8, 9>}, {transform_indices = @transform_4, window_bounds = array<i64: 8, 2560>}]} {
    %c0 = arith.constant 0 : index
    %c0_0 = arith.constant 0 : index
    %c0_1 = arith.constant 0 : index
    %0 = vector.load %arg1[%c0, %c0_0, %c0_1] : memref<1x4x2560xf32, #tpu.memory_space<vmem>>, vector<1x4x2560xf32>
    %1 = vector.shape_cast %0 : vector<1x4x2560xf32> to vector<4x2560xf32>
    %c0_2 = arith.constant 0 : index
    %c0_3 = arith.constant 0 : index
    %2 = vector.load %arg2[%c0_2, %c0_3] : memref<1x2560xf32, #tpu.memory_space<vmem>>, vector<1x2560xf32>
    %c0_4 = arith.constant 0 : index
    %c0_5 = arith.constant 0 : index
    %3 = vector.load %arg3[%c0_4, %c0_5] : memref<4x3xf32, #tpu.memory_space<vmem>>, vector<4x1xf32>
    %c0_6 = arith.constant 0 : index
    %c1 = arith.constant 1 : index
    %4 = vector.load %arg3[%c0_6, %c1] : memref<4x3xf32, #tpu.memory_space<vmem>>, vector<4x1xf32>
    %c0_7 = arith.constant 0 : index
    %c2 = arith.constant 2 : index
    %5 = vector.load %arg3[%c0_7, %c2] : memref<4x3xf32, #tpu.memory_space<vmem>>, vector<4x1xf32>
    %6 = vector.extract_strided_slice %1 {offsets = [0, 0], sizes = [1, 2560], strides = [1, 1]} : vector<4x2560xf32> to vector<1x2560xf32>
    %7 = vector.broadcast %3 : vector<4x1xf32> to vector<4x2560xf32>
    %8 = vector.broadcast %6 : vector<1x2560xf32> to vector<4x2560xf32>
    %9 = arith.mulf %7, %8 : vector<4x2560xf32>
    %10 = vector.extract_strided_slice %1 {offsets = [1, 0], sizes = [1, 2560], strides = [1, 1]} : vector<4x2560xf32> to vector<1x2560xf32>
    %11 = vector.broadcast %4 : vector<4x1xf32> to vector<4x2560xf32>
    %12 = vector.broadcast %10 : vector<1x2560xf32> to vector<4x2560xf32>
    %13 = arith.mulf %11, %12 : vector<4x2560xf32>
    %14 = arith.addf %9, %13 : vector<4x2560xf32>
    %15 = vector.broadcast %5 : vector<4x1xf32> to vector<4x2560xf32>
    %16 = arith.addf %14, %15 : vector<4x2560xf32>
    %17 = vector.extract_strided_slice %1 {offsets = [2, 0], sizes = [1, 2560], strides = [1, 1]} : vector<4x2560xf32> to vector<1x2560xf32>
    %18 = vector.broadcast %3 : vector<4x1xf32> to vector<4x2560xf32>
    %19 = vector.broadcast %17 : vector<1x2560xf32> to vector<4x2560xf32>
    %20 = arith.mulf %18, %19 : vector<4x2560xf32>
    %21 = vector.extract_strided_slice %1 {offsets = [3, 0], sizes = [1, 2560], strides = [1, 1]} : vector<4x2560xf32> to vector<1x2560xf32>
    %22 = vector.broadcast %4 : vector<4x1xf32> to vector<4x2560xf32>
    %23 = vector.broadcast %21 : vector<1x2560xf32> to vector<4x2560xf32>
    %24 = arith.mulf %22, %23 : vector<4x2560xf32>
    %25 = arith.addf %20, %24 : vector<4x2560xf32>
    %26 = vector.broadcast %5 : vector<4x1xf32> to vector<4x2560xf32>
    %27 = arith.addf %25, %26 : vector<4x2560xf32>
    %28 = arith.maximumf %16, %27 : vector<4x2560xf32>
    %cst = arith.constant 0.000000e+00 : f32
    %29 = vector.broadcast %cst : f32 to vector<4x2560xf32>
    %30 = arith.maximumf %28, %29 : vector<4x2560xf32>
    %31 = vector.broadcast %2 : vector<1x2560xf32> to vector<4x2560xf32>
    %32 = arith.mulf %30, %31 : vector<4x2560xf32>
    %c2559_i32 = arith.constant 2559 : i32
    %33 = tpu.dynamic_rotate %32 by %c2559_i32 dim 1 : vector<4x2560xf32>, i32 -> vector<4x2560xf32>
    %c0_8 = arith.constant 0 : index
    %c8 = arith.constant 8 : index
    %34 = vector.load %arg4[%c0_8, %c8] : memref<8x9xf32, #tpu.memory_space<vmem>>, vector<8x1xf32>
    %c0_9 = arith.constant 0 : index
    %c0_10 = arith.constant 0 : index
    %35 = vector.load %arg4[%c0_9, %c0_10] : memref<8x9xf32, #tpu.memory_space<vmem>>, vector<8x1xf32>
    %36 = vector.extract_strided_slice %32 {offsets = [0, 0], sizes = [1, 2560], strides = [1, 1]} : vector<4x2560xf32> to vector<1x2560xf32>
    %37 = vector.broadcast %35 : vector<8x1xf32> to vector<8x2560xf32>
    %38 = vector.broadcast %36 : vector<1x2560xf32> to vector<8x2560xf32>
    %39 = arith.mulf %37, %38 : vector<8x2560xf32>
    %40 = vector.broadcast %34 : vector<8x1xf32> to vector<8x2560xf32>
    %41 = arith.addf %39, %40 : vector<8x2560xf32>
    %c0_11 = arith.constant 0 : index
    %c1_12 = arith.constant 1 : index
    %42 = vector.load %arg4[%c0_11, %c1_12] : memref<8x9xf32, #tpu.memory_space<vmem>>, vector<8x1xf32>
    %43 = vector.extract_strided_slice %32 {offsets = [1, 0], sizes = [1, 2560], strides = [1, 1]} : vector<4x2560xf32> to vector<1x2560xf32>
    %44 = vector.broadcast %42 : vector<8x1xf32> to vector<8x2560xf32>
    %45 = vector.broadcast %43 : vector<1x2560xf32> to vector<8x2560xf32>
    %46 = arith.mulf %44, %45 : vector<8x2560xf32>
    %47 = arith.addf %41, %46 : vector<8x2560xf32>
    %c0_13 = arith.constant 0 : index
    %c2_14 = arith.constant 2 : index
    %48 = vector.load %arg4[%c0_13, %c2_14] : memref<8x9xf32, #tpu.memory_space<vmem>>, vector<8x1xf32>
    %49 = vector.extract_strided_slice %32 {offsets = [2, 0], sizes = [1, 2560], strides = [1, 1]} : vector<4x2560xf32> to vector<1x2560xf32>
    %50 = vector.broadcast %48 : vector<8x1xf32> to vector<8x2560xf32>
    %51 = vector.broadcast %49 : vector<1x2560xf32> to vector<8x2560xf32>
    %52 = arith.mulf %50, %51 : vector<8x2560xf32>
    %53 = arith.addf %47, %52 : vector<8x2560xf32>
    %c0_15 = arith.constant 0 : index
    %c3 = arith.constant 3 : index
    %54 = vector.load %arg4[%c0_15, %c3] : memref<8x9xf32, #tpu.memory_space<vmem>>, vector<8x1xf32>
    %55 = vector.extract_strided_slice %32 {offsets = [3, 0], sizes = [1, 2560], strides = [1, 1]} : vector<4x2560xf32> to vector<1x2560xf32>
    %56 = vector.broadcast %54 : vector<8x1xf32> to vector<8x2560xf32>
    %57 = vector.broadcast %55 : vector<1x2560xf32> to vector<8x2560xf32>
    %58 = arith.mulf %56, %57 : vector<8x2560xf32>
    %59 = arith.addf %53, %58 : vector<8x2560xf32>
    %c0_16 = arith.constant 0 : index
    %c4 = arith.constant 4 : index
    %60 = vector.load %arg4[%c0_16, %c4] : memref<8x9xf32, #tpu.memory_space<vmem>>, vector<8x1xf32>
    %61 = vector.extract_strided_slice %33 {offsets = [0, 0], sizes = [1, 2560], strides = [1, 1]} : vector<4x2560xf32> to vector<1x2560xf32>
    %62 = vector.broadcast %60 : vector<8x1xf32> to vector<8x2560xf32>
    %63 = vector.broadcast %61 : vector<1x2560xf32> to vector<8x2560xf32>
    %64 = arith.mulf %62, %63 : vector<8x2560xf32>
    %65 = arith.addf %59, %64 : vector<8x2560xf32>
    %c0_17 = arith.constant 0 : index
    %c5 = arith.constant 5 : index
    %66 = vector.load %arg4[%c0_17, %c5] : memref<8x9xf32, #tpu.memory_space<vmem>>, vector<8x1xf32>
    %67 = vector.extract_strided_slice %33 {offsets = [1, 0], sizes = [1, 2560], strides = [1, 1]} : vector<4x2560xf32> to vector<1x2560xf32>
    %68 = vector.broadcast %66 : vector<8x1xf32> to vector<8x2560xf32>
    %69 = vector.broadcast %67 : vector<1x2560xf32> to vector<8x2560xf32>
    %70 = arith.mulf %68, %69 : vector<8x2560xf32>
    %71 = arith.addf %65, %70 : vector<8x2560xf32>
    %c0_18 = arith.constant 0 : index
    %c6 = arith.constant 6 : index
    %72 = vector.load %arg4[%c0_18, %c6] : memref<8x9xf32, #tpu.memory_space<vmem>>, vector<8x1xf32>
    %73 = vector.extract_strided_slice %33 {offsets = [2, 0], sizes = [1, 2560], strides = [1, 1]} : vector<4x2560xf32> to vector<1x2560xf32>
    %74 = vector.broadcast %72 : vector<8x1xf32> to vector<8x2560xf32>
    %75 = vector.broadcast %73 : vector<1x2560xf32> to vector<8x2560xf32>
    %76 = arith.mulf %74, %75 : vector<8x2560xf32>
    %77 = arith.addf %71, %76 : vector<8x2560xf32>
    %c0_19 = arith.constant 0 : index
    %c7 = arith.constant 7 : index
    %78 = vector.load %arg4[%c0_19, %c7] : memref<8x9xf32, #tpu.memory_space<vmem>>, vector<8x1xf32>
    %79 = vector.extract_strided_slice %33 {offsets = [3, 0], sizes = [1, 2560], strides = [1, 1]} : vector<4x2560xf32> to vector<1x2560xf32>
    %80 = vector.broadcast %78 : vector<8x1xf32> to vector<8x2560xf32>
    %81 = vector.broadcast %79 : vector<1x2560xf32> to vector<8x2560xf32>
    %82 = arith.mulf %80, %81 : vector<8x2560xf32>
    %83 = arith.addf %77, %82 : vector<8x2560xf32>
    %c2559_i32_20 = arith.constant 2559 : i32
    %84 = tpu.dynamic_rotate %83 by %c2559_i32_20 dim 1 : vector<8x2560xf32>, i32 -> vector<8x2560xf32>
    %85 = arith.maximumf %83, %84 : vector<8x2560xf32>
    %c2558_i32 = arith.constant 2558 : i32
    %86 = tpu.dynamic_rotate %85 by %c2558_i32 dim 1 : vector<8x2560xf32>, i32 -> vector<8x2560xf32>
    %87 = arith.maximumf %85, %86 : vector<8x2560xf32>
    %cst_21 = arith.constant 0.000000e+00 : f32
    %88 = vector.broadcast %cst_21 : f32 to vector<8x2560xf32>
    %89 = arith.maximumf %87, %88 : vector<8x2560xf32>
    %c0_22 = arith.constant 0 : index
    %c0_23 = arith.constant 0 : index
    %90 = vector.load %arg5[%c0_22, %c0_23] : memref<8x2560xf32, #tpu.memory_space<vmem>>, vector<8x2560xf32>
    tpu.vector_store %arg5[%c0_22, %c0_23], %89 {strides = array<i32>} : memref<8x2560xf32, #tpu.memory_space<vmem>>, vector<8x2560xf32>,
    return
  }
  func.func @transform_0(%arg0: i32) -> (i32, i32, i32) {
    %c0_i32 = arith.constant 0 : i32
    %c0_i32_0 = arith.constant 0 : i32
    %c0_i32_1 = arith.constant 0 : i32
    return %arg0, %c0_i32, %c0_i32_0 : i32, i32, i32
  }
  func.func @transform_1(%arg0: i32) -> (i32, i32) {
    %c0_i32 = arith.constant 0 : i32
    %c0_i32_0 = arith.constant 0 : i32
    %c0_i32_1 = arith.constant 0 : i32
    return %c0_i32, %c0_i32_0 : i32, i32
  }
  func.func @transform_2(%arg0: i32) -> (i32, i32) {
    %c0_i32 = arith.constant 0 : i32
    %c0_i32_0 = arith.constant 0 : i32
    %c0_i32_1 = arith.constant 0 : i32
    return %c0_i32, %c0_i32_0 : i32, i32
  }
  func.func @transform_3(%arg0: i32) -> (i32, i32) {
    %c0_i32 = arith.constant 0 : i32
    %c0_i32_0 = arith.constant 0 : i32
    %c0_i32_1 = arith.constant 0 : i32
    return %c0_i32, %c0_i32_0 : i32, i32
  }
  func.func @transform_4(%arg0: i32) -> (i32, i32) {
    %c0_i32 = arith.constant 0 : i32
    %c0_i32_0 = arith.constant 0 : i32
    return %c0_i32, %arg0 : i32, i32
  }
}

</mosaic_0001>

<bundles_post_ra>
// kernel: tile.8
= control target key start
LH: loop header
LB: loop body
LE: loop exit
PB: predicated region body
PF: predicated region fallthrough
CT: control target
= control target key end

     0   :  { %s112_s0 = inlined_call_operand.vmem [shape: f32[20], index: 0, kind: input, shape index: {}]   ;;  %s113_s1 = inlined_call_operand.vmem [shape: f32[128,20], index: 1, kind: output, shape index: {}]  }
   0x1   :  { %v4_v0 = vld [vmem:[%s112_s0] ss:$0 sm:$0xff] }
   0x2   :  { %5 = vst [vmem:[%s113_s1] sm:$0xff] %v4_v0  ;;  %36 = vst [vmem:[%s113_s1 + $0x8] sm:$0xff] %v4_v0 }
   0x3   :  { %37 = vst [vmem:[%s113_s1 + $0x10] sm:$0xff] %v4_v0  ;;  %38 = vst [vmem:[%s113_s1 + $0x18] sm:$0xff] %v4_v0 }
   0x4   :  { %39 = vst [vmem:[%s113_s1 + $0x20] sm:$0xff] %v4_v0  ;;  %40 = vst [vmem:[%s113_s1 + $0x28] sm:$0xff] %v4_v0 }
   0x5   :  { %41 = vst [vmem:[%s113_s1 + $0x30] sm:$0xff] %v4_v0  ;;  %42 = vst [vmem:[%s113_s1 + $0x38] sm:$0xff] %v4_v0 }
   0x6   :  { %43 = vst [vmem:[%s113_s1 + $0x40] sm:$0xff] %v4_v0  ;;  %44 = vst [vmem:[%s113_s1 + $0x48] sm:$0xff] %v4_v0 }
   0x7   :  { %45 = vst [vmem:[%s113_s1 + $0x50] sm:$0xff] %v4_v0  ;;  %46 = vst [vmem:[%s113_s1 + $0x58] sm:$0xff] %v4_v0 }
   0x8   :  { %47 = vst [vmem:[%s113_s1 + $0x60] sm:$0xff] %v4_v0  ;;  %48 = vst [vmem:[%s113_s1 + $0x68] sm:$0xff] %v4_v0 }
   0x9   :  { %49 = vst [vmem:[%s113_s1 + $0x70] sm:$0xff] %v4_v0  ;;  %50 = vst [vmem:[%s113_s1 + $0x78] sm:$0xff] %v4_v0 }

// kernel: tile.9
= control target key start
LH: loop header
LB: loop body
LE: loop exit
PB: predicated region body
PF: predicated region fallthrough
CT: control target
= control target key end

     0   :  { %vm5_vm0 = vcmask 1041409   ;;  %vm9_vm1 = vcmask 1042434   ;;  %vm13_vm2 = vcmask 1043459   ;;  %vm45_vm3 = vcmask 31744   ;;  %s1050_s11 = smov 124   ;;  %s1051_s28 = smov 116   ;;  %s1703_s0 = inlined_call_operand.vmem [shape: f32[128,20], index: 0, kind: input, shape index: {}]   ;;  %s1704_s1 = inlined_call_operand.vmem [shape: f32[1,2560], index: 1, kind: output, shape index: {}]  }
   0x1   :  { %v860_v0 = vld [vmem:[%s1703_s0 + $0x33] sm:$0x1]   ;;  %vm91_vm4 = vcmask 97280   ;;  %v876_v11 = vld [vmem:[%s1703_s0 + $0x19] sm:$0x1]   ;;  %vm87_vm5 = vcmask 64512  }
   0x2   :  { %v861_v1 = vld [vmem:[%s1703_s0 + $0x52] sm:$0x2]   ;;  %v877_v14 = vld [vmem:[%s1703_s0 + $0x38] sm:$0x2]   ;;  %v868_v26 = vld [vmem:[%s1703_s0 + $0x66] sm:$0x1]  }
   0x3   :  { %v862_v2 = vld [vmem:[%s1703_s0 + $0x71] sm:$0x4]   ;;  %v22_v4 = vsel %vm5_vm0, %v861_v1, %v860_v0  ;;  %v878_v15 = vld [vmem:[%s1703_s0 + $0x57] sm:$0x4]   ;;  %v103_v18 = vsel %vm5_vm0, %v877_v14, %v876_v11  ;;  %v869_v29 = vld [vmem:[%s1703_s0 + $0x5] sm:$0x2]  }
   0x4   :  { %v863_v3 = vld [vmem:[%s1703_s0 + $0x10] sm:$0x8]   ;;  %v26_v8 = vsel %vm9_vm1, %v862_v2, %v22_v4  ;;  %v879_v16 = vld [vmem:[%s1703_s0 + $0x76] sm:$0x8]   ;;  %v107_v23 = vsel %vm9_vm1, %v878_v15, %v103_v18  ;;  %v870_v30 = vld [vmem:[%s1703_s0 + $0x24] sm:$0x4]   ;;  %v64_v33 = vsel %vm5_vm0, %v869_v29, %v868_v26 }
   0x5   :  { %v864_v5 = vld [vmem:[%s1703_s0 + $0x53] sm:$0x1]   ;;  %v30_v12 = vsel %vm13_vm2, %v863_v3, %v26_v8  ;;  %v880_v19 = vld [vmem:[%s1703_s0 + $0x39] sm:$0x1]   ;;  %v111_v27 = vsel %vm13_vm2, %v879_v16, %v107_v23  ;;  %v871_v31 = vld [vmem:[%s1703_s0 + $0x43] sm:$0x8]   ;;  %v68_v38 = vsel %vm9_vm1, %v870_v30, %v64_v33 }
   0x6   :  { %v865_v6 = vld [vmem:[%s1703_s0 + $0x72] sm:$0x2]   ;;  %v881_v20 = vld [vmem:[%s1703_s0 + $0x58] sm:$0x2]   ;;  %v872_v34 = vld [vmem:[%s1703_s0 + $0x6] sm:$0x1]   ;;  %v72_v42 = vsel %vm13_vm2, %v871_v31, %v68_v38 }
   0x7   :  { %v866_v7 = vld [vmem:[%s1703_s0 + $0x11] sm:$0x4]   ;;  %v36_v9 = vsel %vm5_vm0, %v865_v6, %v864_v5  ;;  %v882_v21 = vld [vmem:[%s1703_s0 + $0x77] sm:$0x4]   ;;  %v117_v24 = vsel %vm5_vm0, %v881_v20, %v880_v19  ;;  %v873_v35 = vld [vmem:[%s1703_s0 + $0x25] sm:$0x2]  }
   0x8   :  { %v867_v10 = vld [vmem:[%s1703_s0 + $0x30] sm:$0x8]   ;;  %v40_v13 = vsel %vm9_vm1, %v866_v7, %v36_v9  ;;  %v883_v25 = vld [vmem:[%s1703_s0 + $0x16] sm:$0x8]   ;;  %v121_v28 = vsel %vm9_vm1, %v882_v21, %v117_v24  ;;  %v874_v36 = vld [vmem:[%s1703_s0 + $0x44] sm:$0x4]   ;;  %v78_v39 = vsel %vm5_vm0, %v873_v35, %v872_v34 }
   0x9   :  { %v44_v17 = vsel %vm13_vm2, %v867_v10, %v40_v13  ;;  %v125_v32 = vsel %vm13_vm2, %v883_v25, %v121_v28  ;;  %v875_v40 = vld [vmem:[%s1703_s0 + $0x63] sm:$0x8]   ;;  %vm49_vm6 = vcmask 130048   ;;  %v884_v41 = vld [vmem:[%s1703_s0 + $0x4c] sm:$0x1]   ;;  %v82_v43 = vsel %vm9_vm1, %v874_v36, %v78_v39  ;;  %s1052_s16 = smov 120  }
   0xa   :  { %v46_v22 = vsel %vm45_vm3, %v44_v17, %v30_v12  ;;  %v127_v37 = vsel %vm91_vm4, %v125_v32, %v111_v27  ;;  %v885_v44 = vld [vmem:[%s1703_s0 + $0x6b] sm:$0x2]   ;;  %v86_v47 = vsel %vm13_vm2, %v875_v40, %v82_v43  ;;  %v892_v56 = vld [vmem:[%s1703_s0 + $0x1f] sm:$0x1]   ;;  %v896_v0 = vld [vmem:[%s1703_s0 + $0x52] sm:$0x1]  }
   0xb   :  { %47 = vrot.lane.b32.xlu0 %v46_v22, %s1050_s11  ;;  %128 = vrot.lane.b32.xlu1 %v127_v37, %s1051_s28  ;;  %v886_v45 = vld [vmem:[%s1703_s0 + $0xa] sm:$0x4]   ;;  %v143_v48 = vsel %vm5_vm0, %v885_v44, %v884_v41  ;;  %v88_v52 = vsel %vm87_vm5, %v86_v47, %v72_v42  ;;  %v893_v59 = vld [vmem:[%s1703_s0 + $0x3e] sm:$0x2]   ;;  %s1053_s4 = smov 112   ;;  %s1054_s11 = smov 108  }
   0xc   :  { %v887_v46 = vld [vmem:[%s1703_s0 + $0x29] sm:$0x8]   ;;  %v147_v53 = vsel %vm9_vm1, %v886_v45, %v143_v48  ;;  %v894_v60 = vld [vmem:[%s1703_s0 + $0x5d] sm:$0x4]   ;;  %v185_v63 = vsel %vm5_vm0, %v893_v59, %v892_v56  ;;  %v897_v1 = vld [vmem:[%s1703_s0 + $0x71] sm:$0x2]  }
   0xd   :  { %v888_v49 = vld [vmem:[%s1703_s0 + $0x6c] sm:$0x1]   ;;  %v151_v57 = vsel %vm13_vm2, %v887_v46, %v147_v53  ;;  %v895_v61 = vld [vmem:[%s1703_s0 + $0x7c] sm:$0x8]   ;;  %v898_v2 = vld [vmem:[%s1703_s0 + $0x10] sm:$0x4]   ;;  %v189_v4 = vsel %vm9_vm1, %v894_v60, %v185_v63  ;;  %v204_v5 = vsel %vm5_vm0, %v897_v1, %v896_v0 }
   0xe   :  { %v889_v50 = vld [vmem:[%s1703_s0 + $0xb] sm:$0x2]   ;;  %v899_v6 = vld [vmem:[%s1703_s0 + $0x2f] sm:$0x8]   ;;  %v900_v7 = vld [vmem:[%s1703_s0 + $0x5] sm:$0x1]   ;;  %v193_v8 = vsel %vm13_vm2, %v895_v61, %v189_v4  ;;  %v208_v9 = vsel %vm9_vm1, %v898_v2, %v204_v5 }
   0xf   :  { %v890_v51 = vld [vmem:[%s1703_s0 + $0x2a] sm:$0x4]   ;;  %v157_v54 = vsel %vm5_vm0, %v889_v50, %v888_v49  ;;  %89 = vrot.lane.b32.xlu0 %v88_v52, %s1052_s16  ;;  %v901_v10 = vld [vmem:[%s1703_s0 + $0x24] sm:$0x2]   ;;  %v212_v13 = vsel %vm13_vm2, %v899_v6, %v208_v9  ;;  %v904_v15 = vld [vmem:[%s1703_s0 + $0x38] sm:$0x1]  }
  0x10   :  { %v891_v55 = vld [vmem:[%s1703_s0 + $0x49] sm:$0x8]   ;;  %v161_v58 = vsel %vm9_vm1, %v890_v51, %v157_v54  ;;  %v902_v11 = vld [vmem:[%s1703_s0 + $0x43] sm:$0x4]   ;;  %v225_v14 = vsel %vm5_vm0, %v901_v10, %v900_v7  ;;  %v905_v16 = vld [vmem:[%s1703_s0 + $0x57] sm:$0x2]  }
  0x11   :  { %v165_v62 = vsel %vm13_vm2, %v891_v55, %v161_v58  ;;  %v903_v12 = vld [vmem:[%s1703_s0 + $0x62] sm:$0x8]   ;;  %v906_v17 = vld [vmem:[%s1703_s0 + $0x76] sm:$0x4]   ;;  %v229_v18 = vsel %vm9_vm1, %v902_v11, %v225_v14  ;;  %v243_v19 = vsel %vm5_vm0, %v905_v16, %v904_v15  ;;  %v908_v21 = vld [vmem:[%s1703_s0 + $0x6b] sm:$0x1]  }
  0x12   :  { %v167_v3 = vsel %vm49_vm6, %v165_v62, %v151_v57  ;;  %v907_v20 = vld [vmem:[%s1703_s0 + $0x15] sm:$0x8]   ;;  %v233_v22 = vsel %vm13_vm2, %v903_v12, %v229_v18  ;;  %v247_v23 = vsel %vm9_vm1, %v906_v17, %v243_v19  ;;  %v909_v24 = vld [vmem:[%s1703_s0 + $0xa] sm:$0x2]   ;;  %s1055_s28 = smov 104   ;;  %s1056_s6 = smov 100  }
  0x13   :  { %168 = vrot.lane.b32.xlu1 %v167_v3, %s1053_s4  ;;  %194 = vrot.lane.b32.xlu0 %v193_v8, %s1054_s11  ;;  %v910_v25 = vld [vmem:[%s1703_s0 + $0x29] sm:$0x4]   ;;  %v264_v27 = vsel %vm5_vm0, %v909_v24, %v908_v21  ;;  %v912_v28 = vld [vmem:[%s1703_s0 + $0x1e] sm:$0x1]   ;;  %v251_v31 = vsel %vm13_vm2, %v907_v20, %v247_v23  ;;  %s1057_s23 = smov 96   ;;  %s1058_s26 = smov 92  }
  0x14   :  { %v911_v26 = vld [vmem:[%s1703_s0 + $0x48] sm:$0x8]   ;;  %v913_v29 = vld [vmem:[%s1703_s0 + $0x3d] sm:$0x2]   ;;  %v268_v32 = vsel %vm9_vm1, %v910_v25, %v264_v27  ;;  %v916_v35 = vld [vmem:[%s1703_s0 + $0x51] sm:$0x1]  }
  0x15   :  { %v914_v30 = vld [vmem:[%s1703_s0 + $0x5c] sm:$0x4]   ;;  %v285_v33 = vsel %vm5_vm0, %v913_v29, %v912_v28  ;;  %v272_v36 = vsel %vm13_vm2, %v911_v26, %v268_v32  ;;  %v917_v38 = vld [vmem:[%s1703_s0 + $0x70] sm:$0x2]   ;;  %v920_v42 = vld [vmem:[%s1703_s0 + $0x4] sm:$0x1]  }
  0x16   :  { %v915_v34 = vld [vmem:[%s1703_s0 + $0x7b] sm:$0x8]   ;;  %v289_v37 = vsel %vm9_vm1, %v914_v30, %v285_v33  ;;  %v918_v39 = vld [vmem:[%s1703_s0 + $0xf] sm:$0x4]   ;;  %v304_v41 = vsel %vm5_vm0, %v917_v38, %v916_v35  ;;  %v921_v43 = vld [vmem:[%s1703_s0 + $0x23] sm:$0x2]  }
  0x17   :  { %213 = vrot.lane.b32.xlu1 %v212_v13, %s1055_s28  ;;  %234 = vrot.lane.b32.xlu0 %v233_v22, %s1056_s6  ;;  %v919_v40 = vld [vmem:[%s1703_s0 + $0x2e] sm:$0x8]   ;;  %v922_v44 = vld [vmem:[%s1703_s0 + $0x42] sm:$0x4]   ;;  %v308_v45 = vsel %vm9_vm1, %v918_v39, %v304_v41  ;;  %v325_v46 = vsel %vm5_vm0, %v921_v43, %v920_v42  ;;  %v293_v48 = vsel %vm13_vm2, %v915_v34, %v289_v37  ;;  %s1059_s14 = smov 88   ;;  %s1060_s19 = smov 84  }
  0x18   :  { %v924_v47 = vld [vmem:[%s1703_s0 + $0x37] sm:$0x1]   ;;  %v312_v51 = vsel %vm13_vm2, %v919_v40, %v308_v45  ;;  %v329_v52 = vsel %vm9_vm1, %v922_v44, %v325_v46  ;;  %v923_v53 = vld [vmem:[%s1703_s0 + $0x61] sm:$0x8]   ;;  %v928_v55 = vld [vmem:[%s1703_s0 + $0x6a] sm:$0x1]  }
  0x19   :  { %v925_v49 = vld [vmem:[%s1703_s0 + $0x56] sm:$0x2]   ;;  %v929_v56 = vld [vmem:[%s1703_s0 + $0x9] sm:$0x2]   ;;  %v932_v61 = vld [vmem:[%s1703_s0 + $0x1d] sm:$0x1]   ;;  %v333_v0 = vsel %vm13_vm2, %v923_v53, %v329_v52 }
  0x1a   :  { %v926_v50 = vld [vmem:[%s1703_s0 + $0x75] sm:$0x4]   ;;  %v343_v54 = vsel %vm5_vm0, %v925_v49, %v924_v47  ;;  %v364_v59 = vsel %vm5_vm0, %v929_v56, %v928_v55  ;;  %v930_v60 = vld [vmem:[%s1703_s0 + $0x28] sm:$0x4]   ;;  %v933_v62 = vld [vmem:[%s1703_s0 + $0x3c] sm:$0x2]  }
  0x1b   :  { %252 = vrot.lane.b32.xlu1 %v251_v31, %s1057_s23  ;;  %273 = vrot.lane.b32.xlu0 %v272_v36, %s1058_s26  ;;  %v347_v57 = vsel %vm9_vm1, %v926_v50, %v343_v54  ;;  %v927_v58 = vld [vmem:[%s1703_s0 + $0x14] sm:$0x8]   ;;  %v934_v63 = vld [vmem:[%s1703_s0 + $0x5b] sm:$0x4]   ;;  %v385_v1 = vsel %vm5_vm0, %v933_v62, %v932_v61  ;;  %v368_v5 = vsel %vm9_vm1, %v930_v60, %v364_v59  ;;  %s1061_s5 = smov 80   ;;  %s1062_s12 = smov 76  }
  0x1c   :  { %v936_v2 = vld [vmem:[%s1703_s0 + $0x50] sm:$0x1]   ;;  %v351_v4 = vsel %vm13_vm2, %v927_v58, %v347_v57  ;;  %v931_v6 = vld [vmem:[%s1703_s0 + $0x47] sm:$0x8]   ;;  %v940_v7 = vld [vmem:[%s1703_s0 + $0x3] sm:$0x1]   ;;  %v389_v8 = vsel %vm9_vm1, %v934_v63, %v385_v1 }
  0x1d   :  { %v937_v3 = vld [vmem:[%s1703_s0 + $0x6f] sm:$0x2]   ;;  %v935_v9 = vld [vmem:[%s1703_s0 + $0x7a] sm:$0x8]   ;;  %v941_v12 = vld [vmem:[%s1703_s0 + $0x22] sm:$0x2]   ;;  %v372_v17 = vsel %vm13_vm2, %v931_v6, %v368_v5 }
  0x1e   :  { %v404_v10 = vsel %vm5_vm0, %v937_v3, %v936_v2  ;;  %v938_v11 = vld [vmem:[%s1703_s0 + $0xe] sm:$0x4]   ;;  %v425_v13 = vsel %vm5_vm0, %v941_v12, %v940_v7  ;;  %v942_v14 = vld [vmem:[%s1703_s0 + $0x41] sm:$0x4]   ;;  %v944_v15 = vld [vmem:[%s1703_s0 + $0x36] sm:$0x1]   ;;  %v393_v19 = vsel %vm13_vm2, %v935_v9, %v389_v8 }
  0x1f   :  { %294 = vrot.lane.b32.xlu1 %v293_v48, %s1059_s14  ;;  %313 = vrot.lane.b32.xlu0 %v312_v51, %s1060_s19  ;;  %v945_v16 = vld [vmem:[%s1703_s0 + $0x55] sm:$0x2]   ;;  %v948_v18 = vld [vmem:[%s1703_s0 + $0x69] sm:$0x1]   ;;  %v408_v20 = vsel %vm9_vm1, %v938_v11, %v404_v10  ;;  %v429_v23 = vsel %vm9_vm1, %v942_v14, %v425_v13  ;;  %s1063_s23 = smov 72   ;;  %s1064_s30 = smov 68  }
  0x20   :  { %v939_v21 = vld [vmem:[%s1703_s0 + $0x2d] sm:$0x8]   ;;  %v949_v22 = vld [vmem:[%s1703_s0 + $0x8] sm:$0x2]   ;;  %v943_v24 = vld [vmem:[%s1703_s0 + $0x60] sm:$0x8]   ;;  %v443_v25 = vsel %vm5_vm0, %v945_v16, %v944_v15 }
  0x21   :  { %v946_v26 = vld [vmem:[%s1703_s0 + $0x74] sm:$0x4]   ;;  %v464_v27 = vsel %vm5_vm0, %v949_v22, %v948_v18  ;;  %v950_v28 = vld [vmem:[%s1703_s0 + $0x27] sm:$0x4]   ;;  %v952_v29 = vld [vmem:[%s1703_s0 + $0x1c] sm:$0x1]   ;;  %v412_v31 = vsel %vm13_vm2, %v939_v21, %v408_v20  ;;  %v433_v34 = vsel %vm13_vm2, %v943_v24, %v429_v23 }
  0x22   :  { %v953_v30 = vld [vmem:[%s1703_s0 + $0x3b] sm:$0x2]   ;;  %v956_v32 = vld [vmem:[%s1703_s0 + $0x4f] sm:$0x1]   ;;  %v447_v35 = vsel %vm9_vm1, %v946_v26, %v443_v25  ;;  %v947_v36 = vld [vmem:[%s1703_s0 + $0x13] sm:$0x8]   ;;  %v468_v37 = vsel %vm9_vm1, %v950_v28, %v464_v27 }
  0x23   :  { %334 = vrot.lane.b32.xlu1 %v333_v0, %s1061_s5  ;;  %352 = vrot.lane.b32.xlu0 %v351_v4, %s1062_s12  ;;  %v957_v33 = vld [vmem:[%s1703_s0 + $0x6e] sm:$0x2]   ;;  %v951_v38 = vld [vmem:[%s1703_s0 + $0x46] sm:$0x8]   ;;  %v485_v39 = vsel %vm5_vm0, %v953_v30, %v952_v29  ;;  %s1065_s12 = smov 64   ;;  %s1066_s19 = smov 60   ;;  %v451_v45 = vsel %vm13_vm2, %v947_v36, %v447_v35 }
  0x24   :  { %v954_v40 = vld [vmem:[%s1703_s0 + $0x5a] sm:$0x4]   ;;  %v504_v41 = vsel %vm5_vm0, %v957_v33, %v956_v32  ;;  %v958_v42 = vld [vmem:[%s1703_s0 + $0xd] sm:$0x4]   ;;  %v960_v43 = vld [vmem:[%s1703_s0 + $0x2] sm:$0x1]   ;;  %v472_v48 = vsel %vm13_vm2, %v951_v38, %v468_v37 }
  0x25   :  { %v961_v44 = vld [vmem:[%s1703_s0 + $0x21] sm:$0x2]   ;;  %v964_v46 = vld [vmem:[%s1703_s0 + $0x35] sm:$0x1]   ;;  %v489_v49 = vsel %vm9_vm1, %v954_v40, %v485_v39  ;;  %v955_v50 = vld [vmem:[%s1703_s0 + $0x79] sm:$0x8]   ;;  %v508_v51 = vsel %vm9_vm1, %v958_v42, %v504_v41 }
  0x26   :  { %v965_v47 = vld [vmem:[%s1703_s0 + $0x54] sm:$0x2]   ;;  %v959_v52 = vld [vmem:[%s1703_s0 + $0x2c] sm:$0x8]   ;;  %v525_v53 = vsel %vm5_vm0, %v961_v44, %v960_v43  ;;  %v962_v54 = vld [vmem:[%s1703_s0 + $0x40] sm:$0x4]   ;;  %v493_v59 = vsel %vm13_vm2, %v955_v50, %v489_v49 }
  0x27   :  { %373 = vrot.lane.b32.xlu1 %v372_v17, %s1063_s23  ;;  %394 = vrot.lane.b32.xlu0 %v393_v19, %s1064_s30  ;;  %s1067_s30 = smov 56   ;;  %v543_v55 = vsel %vm5_vm0, %v965_v47, %v964_v46  ;;  %v966_v56 = vld [vmem:[%s1703_s0 + $0x73] sm:$0x4]   ;;  %v968_v57 = vld [vmem:[%s1703_s0 + $0x68] sm:$0x1]   ;;  %s1068_s8 = smov 52   ;;  %v512_v62 = vsel %vm13_vm2, %v959_v52, %v508_v51  ;;  %v529_v63 = vsel %vm9_vm1, %v962_v54, %v525_v53 }
  0x28   :  { %v969_v58 = vld [vmem:[%s1703_s0 + $0x7] sm:$0x2]   ;;  %v972_v60 = vld [vmem:[%s1703_s0 + $0x1b] sm:$0x1]   ;;  %v963_v0 = vld [vmem:[%s1703_s0 + $0x5f] sm:$0x8]   ;;  %v547_v1 = vsel %vm9_vm1, %v966_v56, %v543_v55 }
  0x29   :  { %v973_v61 = vld [vmem:[%s1703_s0 + $0x3a] sm:$0x2]   ;;  %v967_v2 = vld [vmem:[%s1703_s0 + $0x12] sm:$0x8]   ;;  %v564_v3 = vsel %vm5_vm0, %v969_v58, %v968_v57  ;;  %v970_v4 = vld [vmem:[%s1703_s0 + $0x26] sm:$0x4]   ;;  %v533_v9 = vsel %vm13_vm2, %v963_v0, %v529_v63 }
  0x2a   :  { %v585_v5 = vsel %vm5_vm0, %v973_v61, %v972_v60  ;;  %v974_v6 = vld [vmem:[%s1703_s0 + $0x59] sm:$0x4]   ;;  %v976_v7 = vld [vmem:[%s1703_s0 + $0x4e] sm:$0x1]   ;;  %s1070_s26 = smov 44   ;;  %v551_v12 = vsel %vm13_vm2, %v967_v2, %v547_v1  ;;  %v568_v13 = vsel %vm9_vm1, %v970_v4, %v564_v3  ;;  %s1072_s17 = smov 36  }
  0x2b   :  { %413 = vrot.lane.b32.xlu1 %v412_v31, %s1065_s12  ;;  %434 = vrot.lane.b32.xlu0 %v433_v34, %s1066_s19  ;;  %s1069_s19 = smov 48   ;;  %v977_v8 = vld [vmem:[%s1703_s0 + $0x6d] sm:$0x2]   ;;  %v980_v10 = vld [vmem:[%s1703_s0 + $0x1] sm:$0x1]   ;;  %v589_v15 = vsel %vm9_vm1, %v974_v6, %v585_v5  ;;  %vm15_vm7 = vcmask 162816  }
  0x2c   :  { %v981_v11 = vld [vmem:[%s1703_s0 + $0x20] sm:$0x2]   ;;  %v971_v14 = vld [vmem:[%s1703_s0 + $0x45] sm:$0x8]   ;;  %v975_v16 = vld [vmem:[%s1703_s0 + $0x78] sm:$0x8]   ;;  %v604_v17 = vsel %vm5_vm0, %v977_v8, %v976_v7 }
  0x2d   :  { %v978_v18 = vld [vmem:[%s1703_s0 + $0xc] sm:$0x4]   ;;  %v625_v20 = vsel %vm5_vm0, %v981_v11, %v980_v10  ;;  %v982_v21 = vld [vmem:[%s1703_s0 + $0x3f] sm:$0x4]   ;;  %v984_v22 = vld [vmem:[%s1703_s0 + $0x34] sm:$0x1]   ;;  %v572_v24 = vsel %vm13_vm2, %v971_v14, %v568_v13  ;;  %v593_v28 = vsel %vm13_vm2, %v975_v16, %v589_v15 }
  0x2e   :  { %v979_v19 = vld [vmem:[%s1703_s0 + $0x2b] sm:$0x8]   ;;  %v985_v23 = vld [vmem:[%s1703_s0 + $0x53] sm:$0x2]   ;;  %v988_v25 = vld [vmem:[%s1703_s0 + $0x67] sm:$0x1]   ;;  %v608_v29 = vsel %vm9_vm1, %v978_v18, %v604_v17  ;;  %v629_v33 = vsel %vm9_vm1, %v982_v21, %v625_v20 }
  0x2f   :  { %452 = vrot.lane.b32.xlu1 %v451_v45, %s1067_s30  ;;  %473 = vrot.lane.b32.xlu0 %v472_v48, %s1068_s8  ;;  %s1071_s8 = smov 40   ;;  %v989_v26 = vld [vmem:[%s1703_s0 + $0x6] sm:$0x2]   ;;  %v858_v27 = vld [vmem:[%s1703_s0 + $0x3e] sm:$0x4]   ;;  %v643_v35 = vsel %vm5_vm0, %v985_v23, %v984_v22  ;;  %s1073_s5 = smov 32   ;;  %v612_v43 = vsel %vm13_vm2, %v979_v19, %v608_v29 }
  0x30   :  { %v859_v30 = vld [vmem:[%s1703_s0 + $0x5d] sm:$0x8]   ;;  %v983_v34 = vld [vmem:[%s1703_s0 + $0x5e] sm:$0x8]   ;;  %v986_v36 = vld [vmem:[%s1703_s0 + $0x72] sm:$0x4]   ;;  %v664_v38 = vsel %vm5_vm0, %v989_v26, %v988_v25 }
  0x31   :  { %v2_v31 = vld [vmem:[%s1703_s0] sm:$0x1]   ;;  %v990_v39 = vld [vmem:[%s1703_s0 + $0x25] sm:$0x4]   ;;  %v992_v40 = vld [vmem:[%s1703_s0 + $0x1a] sm:$0x1]   ;;  %v633_v47 = vsel %vm13_vm2, %v983_v34, %v629_v33  ;;  %v647_v48 = vsel %vm9_vm1, %v986_v36, %v643_v35 }
  0x32   :  { %v857_v32 = vld [vmem:[%s1703_s0 + $0x1f] sm:$0x2]   ;;  %v993_v41 = vld [vmem:[%s1703_s0 + $0x39] sm:$0x2]   ;;  %s1074_s12 = smov 28   ;;  %v668_v50 = vsel %vm9_vm1, %v990_v39, %v664_v38  ;;  %s1075_s23 = smov 24  }
  0x33   :  { %494 = vrot.lane.b32.xlu1 %v493_v59, %s1069_s19  ;;  %513 = vrot.lane.b32.xlu0 %v512_v62, %s1070_s26  ;;  %v6_v37 = vsel %vm5_vm0, %v857_v32, %v2_v31  ;;  %v996_v44 = vld [vmem:[%s1703_s0 + $0x4d] sm:$0x1]   ;;  %v987_v49 = vld [vmem:[%s1703_s0 + $0x11] sm:$0x8]   ;;  %v685_v52 = vsel %vm5_vm0, %v993_v41, %v992_v40  ;;  %s1076_s26 = smov 20   ;;  %s1078_s2 = smov 12  }
  0x34   :  { %v10_v42 = vsel %vm9_vm1, %v858_v27, %v6_v37  ;;  %v997_v45 = vld [vmem:[%s1703_s0 + $0x6c] sm:$0x2]   ;;  %v991_v51 = vld [vmem:[%s1703_s0 + $0x44] sm:$0x8]   ;;  %v994_v53 = vld [vmem:[%s1703_s0 + $0x58] sm:$0x4]   ;;  %v651_v56 = vsel %vm13_vm2, %v987_v49, %v647_v48 }
  0x35   :  { %v14_v46 = vsel %vm13_vm2, %v859_v30, %v10_v42  ;;  %v704_v54 = vsel %vm5_vm0, %v997_v45, %v996_v44  ;;  %v998_v55 = vld [vmem:[%s1703_s0 + $0xb] sm:$0x4]   ;;  %v672_v57 = vsel %vm13_vm2, %v991_v51, %v668_v50  ;;  %v689_v58 = vsel %vm9_vm1, %v994_v53, %v685_v52  ;;  %v995_v59 = vld [vmem:[%s1703_s0 + $0x77] sm:$0x8]   ;;  %s1079_s3 = smov 8   ;;  %s1080_s4 = smov 4  }
  0x36   :  { %16 = vst.msk [vmem:[#allocation0] ss:$40 sm:$0xf] %vm15_vm7, %v14_v46   ;;  %v708_v60 = vsel %vm9_vm1, %v998_v55, %v704_v54  ;;  %v999_v61 = vld [vmem:[%s1703_s0 + $0x2a] sm:$0x8]   ;;  %s1077_s0 = smov 16   ;;  %v693_v62 = vsel %vm13_vm2, %v995_v59, %v689_v58 }
  0x37   :  { %534 = vrot.lane.b32.xlu1 %v533_v9, %s1071_s8  ;;  %552 = vrot.lane.b32.xlu0 %v551_v12, %s1072_s17  ;;  %v712_v63 = vsel %vm13_vm2, %v999_v61, %v708_v60  ;;  %vm54_vm8 = vcmask 1048544   ;;  %vm133_vm9 = vcmask 1048480   ;;  %vm96_vm10 = vcmask 1048512  }
  0x38   :  { %vm175_vm11 = vcmask 1048448   ;;  %vm196_vm12 = vcmask 1048416   ;;  %vm215_vm13 = vcmask 1015616   ;;  %vm236_vm14 = vcmask 982816  }
  0x39   :  { %vm254_vm15 = vcmask 950016   ;;  %vm275_vm0 = vcmask 917216   ;;  %vm296_vm1 = vcmask 884416   ;;  %vm315_vm2 = vcmask 851616  }
  0x3a   :  { %vm415_vm7 = vcmask 687616  }
  0x3b   :  { %573 = vrot.lane.b32.xlu1 %v572_v24, %s1073_s5  ;;  %594 = vrot.lane.b32.xlu0 %v593_v28, %s1074_s12 }
  0x3f   :  { %613 = vrot.lane.b32.xlu1 %v612_v43, %s1075_s23  ;;  %634 = vrot.lane.b32.xlu0 %v633_v47, %s1076_s26 }
  0x43   :  { %652 = vrot.lane.b32.xlu1 %v651_v56, %s1077_s0  ;;  %673 = vrot.lane.b32.xlu0 %v672_v57, %s1078_s2 }
  0x47   :  { %694 = vrot.lane.b32.xlu1 %v693_v62, %s1079_s3  ;;  %713 = vrot.lane.b32.xlu0 %v712_v63, %s1080_s4 }
  0x7d   :  { %v48_v0 = vpop.permute.xlu0 %47   ;;  %v129_v1 = vpop.permute.xlu1 %128  }
  0x7e   :  { %51 = vst.msk [vmem:[#allocation0 + $0x40] ss:$40 sm:$0x7] %vm49_vm6, %v48_v0   ;;  %53 = vst.msk [vmem:[#allocation0 + $0x15] sm:$0x8] %vm49_vm6, %v48_v0   ;;  %vm396_vm6 = vcmask 720416  }
  0x7f   :  { %56 = vst.msk [vmem:[#allocation0 + $0x60] ss:$40 sm:$0x3] %vm54_vm8, %v48_v0   ;;  %58 = vst.msk [vmem:[#allocation0 - $0x40] ss:$40 sm:$0xc] %vm54_vm8, %v48_v0  }
  0x80   :  { %132 = vst.msk [vmem:[#allocation0 + $0x20] ss:$40 sm:$0xf] %vm87_vm5, %v129_v1   ;;  %vm375_vm5 = vcmask 753216   ;;  %vm436_vm8 = vcmask 654816  }
  0x81   :  { %135 = vst.msk [vmem:[#allocation0 + $0x40] ss:$40 sm:$0x7] %vm133_vm9, %v129_v1   ;;  %137 = vst.msk [vmem:[#allocation0 + $0x15] sm:$0x8] %vm133_vm9, %v129_v1   ;;  %v90_v2 = vpop.permute.xlu0 %89   ;;  %vm454_vm9 = vcmask 622016  }
  0x82   :  { %93 = vst.msk [vmem:[#allocation0 + $0x80] ss:$-120 sm:$0x3] %vm91_vm4, %v90_v2   ;;  %95 = vst.msk [vmem:[#allocation0 - $0x20] ss:$40 sm:$0xc] %vm91_vm4, %v90_v2  }
  0x83   :  { %97 = vst.msk [vmem:[#allocation0] ss:$40 sm:$0xf] %vm96_vm10, %v90_v2   ;;  %vm354_vm4 = vcmask 786016   ;;  %vm475_vm10 = vcmask 589216  }
  0x85   :  { %v169_v3 = vpop.permute.xlu1 %168   ;;  %v195_v4 = vpop.permute.xlu0 %194  }
  0x86   :  { %172 = vst.msk [vmem:[#allocation0 + $0x60] ss:$40 sm:$0x3] %vm45_vm3, %v169_v3   ;;  %174 = vst.msk [vmem:[#allocation0 - $0x40] ss:$40 sm:$0xc] %vm45_vm3, %v169_v3  }
  0x87   :  { %177 = vst.msk [vmem:[#allocation0 + $0x80] ss:$-120 sm:$0x3] %vm175_vm11, %v169_v3   ;;  %179 = vst.msk [vmem:[#allocation0 - $0x20] ss:$40 sm:$0xc] %vm175_vm11, %v169_v3  }
  0x88   :  { %198 = vst.msk [vmem:[#allocation0 + $0x20] ss:$40 sm:$0xf] %vm196_vm12, %v195_v4   ;;  %vm336_vm3 = vcmask 818816   ;;  %vm496_vm11 = vcmask 556416   ;;  %vm515_vm12 = vcmask 523616  }
  0x89   :  { %v214_v5 = vpop.permute.xlu1 %213   ;;  %v235_v6 = vpop.permute.xlu0 %234  }
  0x8a   :  { %217 = vst.msk [vmem:[#allocation0 + $0x60] ss:$40 sm:$0x3] %vm215_vm13, %v214_v5   ;;  %219 = vst.msk [vmem:[#allocation0 - $0x40] ss:$40 sm:$0xc] %vm215_vm13, %v214_v5  }
  0x8b   :  { %237 = vst.msk [vmem:[#allocation0] ss:$40 sm:$0xf] %vm236_vm14, %v235_v6   ;;  %vm536_vm13 = vcmask 490816   ;;  %vm554_vm14 = vcmask 458016  }
  0x8d   :  { %v253_v7 = vpop.permute.xlu1 %252   ;;  %v274_v8 = vpop.permute.xlu0 %273  }
  0x8e   :  { %256 = vst.msk [vmem:[#allocation0 + $0x40] ss:$40 sm:$0x7] %vm254_vm15, %v253_v7   ;;  %258 = vst.msk [vmem:[#allocation0 + $0x15] sm:$0x8] %vm254_vm15, %v253_v7   ;;  %vm575_vm15 = vcmask 425216  }
  0x8f   :  { %277 = vst.msk [vmem:[#allocation0 + $0x80] ss:$-120 sm:$0x3] %vm275_vm0, %v274_v8   ;;  %279 = vst.msk [vmem:[#allocation0 - $0x20] ss:$40 sm:$0xc] %vm275_vm0, %v274_v8  }
  0x90   :  { %vm596_vm0 = vcmask 392416  }
  0x91   :  { %v295_v9 = vpop.permute.xlu1 %294   ;;  %v314_v10 = vpop.permute.xlu0 %313  }
  0x92   :  { %298 = vst.msk [vmem:[#allocation0 + $0x20] ss:$40 sm:$0xf] %vm296_vm1, %v295_v9   ;;  %vm615_vm1 = vcmask 359616  }
  0x93   :  { %317 = vst.msk [vmem:[#allocation0 + $0x60] ss:$40 sm:$0x3] %vm315_vm2, %v314_v10   ;;  %319 = vst.msk [vmem:[#allocation0 - $0x40] ss:$40 sm:$0xc] %vm315_vm2, %v314_v10  }
  0x94   :  { %vm636_vm2 = vcmask 326816  }
  0x95   :  { %v335_v11 = vpop.permute.xlu1 %334   ;;  %v353_v12 = vpop.permute.xlu0 %352  }
  0x96   :  { %337 = vst.msk [vmem:[#allocation0] ss:$40 sm:$0xf] %vm336_vm3, %v335_v11   ;;  %vm654_vm3 = vcmask 294016  }
  0x97   :  { %356 = vst.msk [vmem:[#allocation0 + $0x40] ss:$40 sm:$0x7] %vm354_vm4, %v353_v12   ;;  %358 = vst.msk [vmem:[#allocation0 + $0x15] sm:$0x8] %vm354_vm4, %v353_v12   ;;  %vm675_vm4 = vcmask 261216  }
  0x99   :  { %v374_v13 = vpop.permute.xlu1 %373   ;;  %v395_v14 = vpop.permute.xlu0 %394  }
  0x9a   :  { %377 = vst.msk [vmem:[#allocation0 + $0x80] ss:$-120 sm:$0x3] %vm375_vm5, %v374_v13   ;;  %379 = vst.msk [vmem:[#allocation0 - $0x20] ss:$40 sm:$0xc] %vm375_vm5, %v374_v13  }
  0x9b   :  { %398 = vst.msk [vmem:[#allocation0 + $0x20] ss:$40 sm:$0xf] %vm396_vm6, %v395_v14   ;;  %vm696_vm5 = vcmask 228416   ;;  %vm715_vm6 = vcmask 195616  }
  0x9d   :  { %v414_v15 = vpop.permute.xlu1 %413   ;;  %v435_v16 = vpop.permute.xlu0 %434  }
  0x9e   :  { %417 = vst.msk [vmem:[#allocation0 + $0x60] ss:$40 sm:$0x3] %vm415_vm7, %v414_v15   ;;  %419 = vst.msk [vmem:[#allocation0 - $0x40] ss:$40 sm:$0xc] %vm415_vm7, %v414_v15  }
  0x9f   :  { %437 = vst.msk [vmem:[#allocation0] ss:$40 sm:$0xf] %vm436_vm8, %v435_v16  }
  0xa1   :  { %v453_v17 = vpop.permute.xlu1 %452   ;;  %v474_v18 = vpop.permute.xlu0 %473  }
  0xa2   :  { %456 = vst.msk [vmem:[#allocation0 + $0x40] ss:$40 sm:$0x7] %vm454_vm9, %v453_v17   ;;  %458 = vst.msk [vmem:[#allocation0 + $0x15] sm:$0x8] %vm454_vm9, %v453_v17  }
  0xa3   :  { %477 = vst.msk [vmem:[#allocation0 + $0x80] ss:$-120 sm:$0x3] %vm475_vm10, %v474_v18   ;;  %479 = vst.msk [vmem:[#allocation0 - $0x20] ss:$40 sm:$0xc] %vm475_vm10, %v474_v18  }
  0xa5   :  { %v495_v19 = vpop.permute.xlu1 %494   ;;  %v514_v20 = vpop.permute.xlu0 %513  }
  0xa6   :  { %498 = vst.msk [vmem:[#allocation0 + $0x20] ss:$40 sm:$0xf] %vm496_vm11, %v495_v19  }
  0xa7   :  { %517 = vst.msk [vmem:[#allocation0 + $0x60] ss:$40 sm:$0x3] %vm515_vm12, %v514_v20   ;;  %519 = vst.msk [vmem:[#allocation0 - $0x40] ss:$40 sm:$0xc] %vm515_vm12, %v514_v20  }
  0xa9   :  { %v535_v21 = vpop.permute.xlu1 %534   ;;  %v553_v22 = vpop.permute.xlu0 %552  }
  0xaa   :  { %537 = vst.msk [vmem:[#allocation0] ss:$40 sm:$0xf] %vm536_vm13, %v535_v21  }
  0xab   :  { %556 = vst.msk [vmem:[#allocation0 + $0x40] ss:$40 sm:$0x7] %vm554_vm14, %v553_v22   ;;  %558 = vst.msk [vmem:[#allocation0 + $0x15] sm:$0x8] %vm554_vm14, %v553_v22  }
  0xad   :  { %v574_v23 = vpop.permute.xlu1 %573   ;;  %v595_v24 = vpop.permute.xlu0 %594  }
  0xae   :  { %577 = vst.msk [vmem:[#allocation0 + $0x80] ss:$-120 sm:$0x3] %vm575_vm15, %v574_v23   ;;  %579 = vst.msk [vmem:[#allocation0 - $0x20] ss:$40 sm:$0xc] %vm575_vm15, %v574_v23  }
  0xaf   :  { %598 = vst.msk [vmem:[#allocation0 + $0x20] ss:$40 sm:$0xf] %vm596_vm0, %v595_v24  }
  0xb1   :  { %v614_v25 = vpop.permute.xlu1 %613   ;;  %v635_v26 = vpop.permute.xlu0 %634  }
  0xb2   :  { %617 = vst.msk [vmem:[#allocation0 + $0x60] ss:$40 sm:$0x3] %vm615_vm1, %v614_v25   ;;  %619 = vst.msk [vmem:[#allocation0 - $0x40] ss:$40 sm:$0xc] %vm615_vm1, %v614_v25  }
  0xb3   :  { %637 = vst.msk [vmem:[#allocation0] ss:$40 sm:$0xf] %vm636_vm2, %v635_v26  }
  0xb5   :  { %v653_v27 = vpop.permute.xlu1 %652   ;;  %v674_v28 = vpop.permute.xlu0 %673  }
  0xb6   :  { %656 = vst.msk [vmem:[#allocation0 + $0x40] ss:$40 sm:$0x7] %vm654_vm3, %v653_v27   ;;  %658 = vst.msk [vmem:[#allocation0 + $0x15] sm:$0x8] %vm654_vm3, %v653_v27  }
  0xb7   :  { %677 = vst.msk [vmem:[#allocation0 + $0x80] ss:$-120 sm:$0x3] %vm675_vm4, %v674_v28   ;;  %679 = vst.msk [vmem:[#allocation0 - $0x20] ss:$40 sm:$0xc] %vm675_vm4, %v674_v28  }
  0xb9   :  { %v695_v29 = vpop.permute.xlu1 %694   ;;  %v714_v33 = vpop.permute.xlu0 %713  }
  0xba   :  { %v723_v30 = vld [vmem:[#allocation0] sm:$0x1]  ;;  %v750_v31 = vld [vmem:[#allocation0 + $0x28] sm:$0x1]  ;;  %v780_v32 = vld [vmem:[#allocation0 + $0x50] sm:$0x1] }
  0xbb   :  { %698 = vst.msk [vmem:[#allocation0 + $0x20] ss:$40 sm:$0xf] %vm696_vm5, %v695_v29   ;;  %725 = vst [vmem:[%s1704_s1] sm:$0x1] %v723_v30  ;;  %v810_v34 = vld [vmem:[#allocation0 + $0x78] sm:$0x1] }
  0xbc   :  { %1004 = vst [vmem:[%s1704_s1 + $0x5] sm:$0x1] %v750_v31  ;;  %1009 = vst [vmem:[%s1704_s1 + $0xa] sm:$0x1] %v780_v32 }
  0xbd   :  { %717 = vst.msk [vmem:[#allocation0 + $0x60] ss:$40 sm:$0x3] %vm715_vm6, %v714_v33   ;;  %719 = vst.msk [vmem:[#allocation0 - $0x40] ss:$40 sm:$0xc] %vm715_vm6, %v714_v33  }
  0xbe   :  { %1014 = vst [vmem:[%s1704_s1 + $0xf] sm:$0x1] %v810_v34  ;;  %v738_v35 = vld [vmem:[#allocation0 + $0x18] sm:$0x1]  ;;  %v768_v36 = vld [vmem:[#allocation0 + $0x40] sm:$0x1] }
  0xbf   :  { %v798_v37 = vld [vmem:[#allocation0 + $0x68] sm:$0x1]  ;;  %1002 = vst [vmem:[%s1704_s1 + $0x3] sm:$0x1] %v738_v35  ;;  %1007 = vst [vmem:[%s1704_s1 + $0x8] sm:$0x1] %v768_v36 }
  0xc0   :  { %1012 = vst [vmem:[%s1704_s1 + $0xd] sm:$0x1] %v798_v37  ;;  %v828_v38 = vld [vmem:[#allocation0 + $0x90] sm:$0x1]  ;;  %v727_v39 = vld [vmem:[#allocation0 + $0x8] sm:$0x1] }
  0xc1   :  { %v756_v40 = vld [vmem:[#allocation0 + $0x30] sm:$0x1]  ;;  %1017 = vst [vmem:[%s1704_s1 + $0x12] sm:$0x1] %v828_v38  ;;  %1000 = vst [vmem:[%s1704_s1 + $0x1] sm:$0x1] %v727_v39 }
  0xc2   :  { %1005 = vst [vmem:[%s1704_s1 + $0x6] sm:$0x1] %v756_v40  ;;  %v786_v41 = vld [vmem:[#allocation0 + $0x58] sm:$0x1]  ;;  %v816_v42 = vld [vmem:[#allocation0 + $0x80] sm:$0x1] }
  0xc3   :  { %1010 = vst [vmem:[%s1704_s1 + $0xb] sm:$0x1] %v786_v41  ;;  %1015 = vst [vmem:[%s1704_s1 + $0x10] sm:$0x1] %v816_v42  ;;  %v744_v43 = vld [vmem:[#allocation0 + $0x20] sm:$0x1] }
  0xc4   :  { %v774_v44 = vld [vmem:[#allocation0 + $0x48] sm:$0x1]  ;;  %v804_v45 = vld [vmem:[#allocation0 + $0x70] sm:$0x1]  ;;  %1003 = vst [vmem:[%s1704_s1 + $0x4] sm:$0x1] %v744_v43 }
  0xc5   :  { %1008 = vst [vmem:[%s1704_s1 + $0x9] sm:$0x1] %v774_v44  ;;  %1013 = vst [vmem:[%s1704_s1 + $0xe] sm:$0x1] %v804_v45  ;;  %v834_v46 = vld [vmem:[#allocation0 + $0x98] sm:$0x1] }
  0xc6   :  { %v732_v47 = vld [vmem:[#allocation0 + $0x10] sm:$0x1]  ;;  %v762_v48 = vld [vmem:[#allocation0 + $0x38] sm:$0x1]  ;;  %1018 = vst [vmem:[%s1704_s1 + $0x13] sm:$0x1] %v834_v46 }
  0xc7   :  { %1001 = vst [vmem:[%s1704_s1 + $0x2] sm:$0x1] %v732_v47  ;;  %1006 = vst [vmem:[%s1704_s1 + $0x7] sm:$0x1] %v762_v48  ;;  %v792_v49 = vld [vmem:[#allocation0 + $0x60] sm:$0x1] }
  0xc8   :  { %v822_v50 = vld [vmem:[#allocation0 + $0x88] sm:$0x1]  ;;  %1011 = vst [vmem:[%s1704_s1 + $0xc] sm:$0x1] %v792_v49 }
  0xc9   :  { %1016 = vst [vmem:[%s1704_s1 + $0x11] sm:$0x1] %v822_v50 }

// kernel: cnn_forward.1
= control target key start
LH: loop header
LB: loop body
LE: loop exit
PB: predicated region body
PF: predicated region fallthrough
CT: control target
= control target key end

     0   :  { %v2386_v0 = vmov 0   ;;  %v2387_v2 = vmov 2   ;;  %v2388_v4 = vmov 1   ;;  %v2389_v5 = vmov 8   ;;  %s2396_s16 = smov 126   ;;  %s4377_s2 = inlined_call_operand.vmem [shape: f32[4,3], index: 2, kind: input, shape index: {}]   ;;  %s4378_s3 = inlined_call_operand.vmem [shape: f32[8,9], index: 3, kind: input, shape index: {}]   ;;  %s4379_s0 = inlined_call_operand.vmem [shape: f32[1,4,2560], index: 0, kind: input, shape index: {}]   ;;  %s4380_s1 = inlined_call_operand.vmem [shape: f32[1,2560], index: 1, kind: input, shape index: {}]   ;;  %s4381_s4 = inlined_call_operand.vmem [shape: f32[8,2560], index: 4, kind: output, shape index: {}]  }
   0x1   :  { %2374 = vset.pattern.permute.xlu0 %v2386_v0  ;;  %v30_v1 = vld [vmem:[%s4377_s2] sm:$0xf]  ;;  %2376 = vset.pattern.permute.xlu1 %v2387_v2  ;;  %v2390_v6 = vmov 3   ;;  %v2391_v7 = vmov 4   ;;  %v2392_v8 = vmov 5   ;;  %v4383_v9 = vmov 7  }
   0x2   :  { %33 = vperm.xlu0 %2374, %v30_v1   ;;  %471 = vperm.xlu1 %2376, %v30_v1   ;;  %v2428_v3 = vld [vmem:[%s4378_s3] sm:$0xff]  ;;  %v2394_v10 = vmov 6   ;;  %v4382_v11 = vlaneseq  ;;  %v18_v23 = vld [vmem:[%s4379_s0 + $0x8] sm:$0xff]  ;;  %v19_v40 = vld [vmem:[%s4379_s0 + $0x10] sm:$0xff] }
   0x3   :  { %4396 = vst [vmem:[#allocation2_spill] sm:$0xff] %v2428_v3  ;;  %v17_v14 = vld [vmem:[%s4379_s0] sm:$0xff] }
   0x4   :  { %v47_v12 = vshrl.u32 %v4382_v11, 7  ;;  %v2502_v45 = vld [vmem:[%s4380_s1] sm:$0xff] }
   0x6   :  { %2375 = vset.pattern.permute.xlu0 %v2388_v4  ;;  %2377 = vset.pattern.permute.xlu1 %v2386_v0  ;;  %v2439_v13 = vsub.s32 4, %v47_v12  ;;  %v2444_v15 = vsub.s32 0, %v47_v12  ;;  %v2446_v16 = vsub.s32 5, %v47_v12  ;;  %v2448_v17 = vsub.s32 6, %v47_v12 }
   0x7   :  { %247 = vperm.xlu0 %2375, %v30_v1   ;;  %1163 = vperm.xlu1 %2377, %v2428_v3   ;;  %v2450_v18 = vsub.s32 7, %v47_v12  ;;  %v2452_v19 = vsub.s32 1, %v47_v12  ;;  %v2454_v20 = vsub.s32 2, %v47_v12  ;;  %v2456_v21 = vsub.s32 3, %v47_v12 }
   0x8   :  { %4397 = vst [vmem:[#allocation3_spill] sm:$0xff] %v2439_v13  ;;  %v53_v22 = vrot.slane %v17_v14, %v2439_v13  ;;  %v257_v24 = vrot.slane %v17_v14, %v2446_v16  ;;  %v501_v25 = vrot.slane %v17_v14, %v2448_v17  ;;  %v49_v27 = vrot.slane %v17_v14, %v2444_v15 }
   0x9   :  { %v701_v26 = vrot.slane %v17_v14, %v2450_v18  ;;  %v253_v28 = vrot.slane %v17_v14, %v2452_v19  ;;  %v497_v29 = vrot.slane %v17_v14, %v2454_v20  ;;  %v697_v30 = vrot.slane %v17_v14, %v2456_v21 }
   0xa   :  { %v61_v31 = vrot.slane %v18_v23, %v2439_v13  ;;  %v2471_v32 = vrot.slane %v53_v22, %v2444_v15  ;;  %v265_v33 = vrot.slane %v18_v23, %v2446_v16  ;;  %v509_v34 = vrot.slane %v18_v23, %v2448_v17 }
   0xb   :  { %1291 = vperm.xlu0 %2375, %v2428_v3   ;;  %2378 = vset.pattern.permute.xlu1 %v2389_v5  ;;  %v709_v35 = vrot.slane %v18_v23, %v2450_v18  ;;  %v2477_v36 = vrot.slane %v257_v24, %v2452_v19  ;;  %v2480_v37 = vrot.slane %v501_v25, %v2454_v20 }
   0xc   :  { %1267 = vperm.xlu1 %2378, %v2428_v3   ;;  %v2483_v38 = vrot.slane %v701_v26, %v2456_v21  ;;  %v2486_v39 = vrot.slane %v49_v27, %v2444_v15  ;;  %v2492_v41 = vrot.slane %v253_v28, %v2452_v19  ;;  %v2495_v42 = vrot.slane %v497_v29, %v2454_v20  ;;  %v21_v26 = vld [vmem:[%s4379_s0 + $0x20] sm:$0xff] }
   0xd   :  { %v57_v43 = vrot.slane %v18_v23, %v2444_v15  ;;  %v261_v44 = vrot.slane %v18_v23, %v2452_v19  ;;  %v2505_v46 = vrot.slane %v697_v30, %v2456_v21  ;;  %v2508_v47 = vrot.slane %v61_v31, %v2444_v15 }
   0xe   :  { %v505_v48 = vrot.slane %v18_v23, %v2454_v20  ;;  %v705_v49 = vrot.slane %v18_v23, %v2456_v21  ;;  %v2513_v50 = vrot.slane %v265_v33, %v2452_v19  ;;  %v2516_v51 = vrot.slane %v509_v34, %v2454_v20 }
   0xf   :  { %2380 = vset.pattern.permute.xlu0 %v2390_v6  ;;  %v2519_v52 = vrot.slane %v709_v35, %v2456_v21  ;;  %v69_v53 = vrot.slane %v19_v40, %v2439_v13  ;;  %v273_v54 = vrot.slane %v19_v40, %v2446_v16  ;;  %v517_v55 = vrot.slane %v19_v40, %v2448_v17 }
  0x10   :  { %2379 = vset.pattern.permute.xlu1 %v2387_v2  ;;  %1539 = vperm.xlu0 %2380, %v2428_v3   ;;  %v717_v56 = vrot.slane %v19_v40, %v2450_v18  ;;  %v65_v57 = vrot.slane %v19_v40, %v2444_v15  ;;  %v2529_v59 = vrot.slane %v57_v43, %v2444_v15  ;;  %v20_v2 = vld [vmem:[%s4379_s0 + $0x18] sm:$0xff] }
  0x11   :  { %1415 = vperm.xlu1 %2379, %v2428_v3   ;;  %v2532_v60 = vrot.slane %v261_v44, %v2452_v19  ;;  %v269_v61 = vrot.slane %v19_v40, %v2452_v19  ;;  %v2538_v63 = vrot.slane %v505_v48, %v2454_v20  ;;  %v2541_v0 = vrot.slane %v705_v49, %v2456_v21 }
  0x12   :  { %v513_v1 = vrot.slane %v19_v40, %v2454_v20  ;;  %v2552_v6 = vrot.slane %v69_v53, %v2444_v15  ;;  %v2562_v12 = vrot.slane %v717_v56, %v2456_v21  ;;  %v2565_v14 = vrot.slane %v65_v57, %v2444_v15 }
  0x13   :  { %v2568_v22 = vrot.slane %v269_v61, %v2452_v19  ;;  %v77_v23 = vrot.slane %v20_v2, %v2439_v13  ;;  %v281_v24 = vrot.slane %v20_v2, %v2446_v16  ;;  %v525_v25 = vrot.slane %v20_v2, %v2448_v17 }
  0x14   :  { %2383 = vset.pattern.permute.xlu0 %v2394_v10  ;;  %v2559_v10 = vrot.slane %v517_v55, %v2454_v20  ;;  %v2577_v27 = vrot.slane %v513_v1, %v2454_v20  ;;  %v725_v28 = vrot.slane %v20_v2, %v2450_v18  ;;  %v73_v29 = vrot.slane %v20_v2, %v2444_v15 }
  0x15   :  { %2381 = vset.pattern.permute.xlu1 %v2391_v7  ;;  %v713_v7 = vrot.slane %v19_v40, %v2456_v21  ;;  %v277_v30 = vrot.slane %v20_v2, %v2452_v19  ;;  %v521_v34 = vrot.slane %v20_v2, %v2454_v20  ;;  %v721_v35 = vrot.slane %v20_v2, %v2456_v21  ;;  %v22_v2 = vld [vmem:[%s4379_s0 + $0x28] sm:$0xff] }
  0x16   :  { %1663 = vperm.xlu1 %2381, %v2428_v3   ;;  %v85_v43 = vrot.slane %v21_v26, %v2439_v13  ;;  %v289_v44 = vrot.slane %v21_v26, %v2446_v16  ;;  %v533_v48 = vrot.slane %v21_v26, %v2448_v17  ;;  %v2595_v49 = vrot.slane %v77_v23, %v2444_v15 }
  0x17   :  { %v2585_v33 = vrot.slane %v713_v7, %v2456_v21  ;;  %v2598_v53 = vrot.slane %v281_v24, %v2452_v19  ;;  %v733_v55 = vrot.slane %v21_v26, %v2450_v18  ;;  %v2605_v56 = vrot.slane %v725_v28, %v2456_v21  ;;  %v2629_v28 = vld [vmem:[%s4380_s1 + $0x8] sm:$0xff] }
  0x18   :  { %v2608_v57 = vrot.slane %v73_v29, %v2444_v15  ;;  %v2611_v61 = vrot.slane %v277_v30, %v2452_v19  ;;  %v81_v1 = vrot.slane %v21_v26, %v2444_v15  ;;  %v2620_v23 = vrot.slane %v521_v34, %v2454_v20 }
  0x19   :  { %v2623_v24 = vrot.slane %v721_v35, %v2456_v21  ;;  %v2632_v29 = vrot.slane %v85_v43, %v2444_v15  ;;  %v2635_v30 = vrot.slane %v289_v44, %v2452_v19  ;;  %v2638_v11 = vrot.slane %v533_v48, %v2454_v20  ;;  %v23_v43 = vld [vmem:[%s4379_s0 + $0x30] sm:$0xff] }
  0x1a   :  { %2382 = vset.pattern.permute.xlu1 %v2392_v8  ;;  %v2556_v8 = vrot.slane %v273_v54, %v2452_v19  ;;  %v2601_v54 = vrot.slane %v525_v25, %v2454_v20  ;;  %v285_v25 = vrot.slane %v21_v26, %v2452_v19  ;;  %v529_v34 = vrot.slane %v21_v26, %v2454_v20 }
  0x1b   :  { %1787 = vperm.xlu1 %2382, %v2428_v3   ;;  %4398 = vst [vmem:[#allocation4_spill] sm:$0xff] %v2623_v24  ;;  %4399 = vst [vmem:[#allocation5_spill] sm:$0xff] %v2635_v30  ;;  %v729_v7 = vrot.slane %v21_v26, %v2456_v21  ;;  %v93_v40 = vrot.slane %v22_v2, %v2439_v13  ;;  %v2652_v44 = vrot.slane %v81_v1, %v2444_v15 }
  0x1c   :  { %v297_v48 = vrot.slane %v22_v2, %v2446_v16  ;;  %v541_v31 = vrot.slane %v22_v2, %v2448_v17  ;;  %v741_v35 = vrot.slane %v22_v2, %v2450_v18  ;;  %v2660_v26 = vrot.slane %v285_v25, %v2452_v19 }
  0x1d   :  { %v89_v5 = vrot.slane %v22_v2, %v2444_v15  ;;  %v293_v4 = vrot.slane %v22_v2, %v2452_v19  ;;  %v2665_v62 = vrot.slane %v529_v34, %v2454_v20  ;;  %v537_v1 = vrot.slane %v22_v2, %v2454_v20 }
  0x1e   :  { %4401 = vst [vmem:[#allocation7_spill] sm:$0xff] %v2660_v26  ;;  %v737_v58 = vrot.slane %v22_v2, %v2456_v21  ;;  %v101_v3 = vrot.slane %v23_v43, %v2439_v13  ;;  %v305_v25 = vrot.slane %v23_v43, %v2446_v16  ;;  %v549_v26 = vrot.slane %v23_v43, %v2448_v17 }
  0x1f   :  { %2384 = vset.pattern.permute.xlu1 %v4383_v9  ;;  %v2644_v9 = vrot.slane %v733_v55, %v2456_v21  ;;  %v2674_v55 = vrot.slane %v93_v40, %v2444_v15  ;;  %v2679_v30 = vrot.slane %v297_v48, %v2452_v19  ;;  %v2682_v34 = vrot.slane %v541_v31, %v2454_v20  ;;  %v24_v31 = vld [vmem:[%s4379_s0 + $0x38] sm:$0xff] }
  0x20   :  { %v2685_v2 = vrot.slane %v741_v35, %v2456_v21  ;;  %v749_v24 = vrot.slane %v23_v43, %v2450_v18  ;;  %v2691_v40 = vrot.slane %v89_v5, %v2444_v15  ;;  %v97_v48 = vrot.slane %v23_v43, %v2444_v15 }
  0x21   :  { %4400 = vst [vmem:[#allocation6_spill] sm:$0xff] %v2644_v9  ;;  %v2671_v9 = vrot.slane %v729_v7, %v2456_v21  ;;  %4403 = vst [vmem:[#allocation9_spill] sm:$0xff] %v2674_v55  ;;  %v2694_v55 = vrot.slane %v293_v4, %v2452_v19  ;;  %v2701_v35 = vrot.slane %v537_v1, %v2454_v20 }
  0x22   :  { %4404 = vst [vmem:[#allocation10_spill] sm:$0xff] %v2679_v30  ;;  %4405 = vst [vmem:[#allocation11_spill] sm:$0xff] %v2682_v34  ;;  %v2707_v7 = vrot.slane %v101_v3, %v2444_v15  ;;  %v301_v5 = vrot.slane %v23_v43, %v2452_v19  ;;  %v2711_v4 = vrot.slane %v305_v25, %v2452_v19  ;;  %v25_v25 = vld [vmem:[%s4379_s0 + $0x40] sm:$0xff] }
  0x23   :  { %4402 = vst [vmem:[#allocation8_spill] sm:$0xff] %v2671_v9  ;;  %4406 = vst [vmem:[#allocation12_spill] sm:$0xff] %v2685_v2  ;;  %v2704_v2 = vrot.slane %v737_v58, %v2456_v21  ;;  %v745_v34 = vrot.slane %v23_v43, %v2456_v21  ;;  %v2719_v1 = vrot.slane %v749_v24, %v2456_v21 }
  0x24   :  { %4407 = vst [vmem:[#allocation13_spill] sm:$0xff] %v2691_v40  ;;  %4408 = vst [vmem:[#allocation14_spill] sm:$0xff] %v2694_v55  ;;  %v2714_v55 = vrot.slane %v549_v26, %v2454_v20  ;;  %v545_v40 = vrot.slane %v23_v43, %v2454_v20  ;;  %v109_v58 = vrot.slane %v24_v31, %v2439_v13 }
  0x25   :  { %4409 = vst [vmem:[#allocation15_spill] sm:$0xff] %v2701_v35  ;;  %4410 = vst [vmem:[#allocation16_spill] sm:$0xff] %v2704_v2  ;;  %v313_v3 = vrot.slane %v24_v31, %v2446_v16  ;;  %v757_v43 = vrot.slane %v24_v31, %v2450_v18  ;;  %v105_v24 = vrot.slane %v24_v31, %v2444_v15 }
  0x26   :  { %4411 = vst [vmem:[#allocation17_spill] sm:$0xff] %v2707_v7  ;;  %4412 = vst [vmem:[#allocation18_spill] sm:$0xff] %v2711_v4  ;;  %v557_v7 = vrot.slane %v24_v31, %v2448_v17  ;;  %v309_v4 = vrot.slane %v24_v31, %v2452_v19  ;;  %v553_v2 = vrot.slane %v24_v31, %v2454_v20 }
  0x27   :  { %4413 = vst [vmem:[#allocation19_spill] sm:$0xff] %v2714_v55  ;;  %4414 = vst [vmem:[#allocation20_spill] sm:$0xff] %v2719_v1  ;;  %v2730_v55 = vrot.slane %v97_v48, %v2444_v15  ;;  %v2735_v1 = vrot.slane %v301_v5, %v2452_v19  ;;  %v753_v35 = vrot.slane %v24_v31, %v2456_v21 }
  0x28   :  { %v2743_v26 = vrot.slane %v545_v40, %v2454_v20  ;;  %v2746_v48 = vrot.slane %v745_v34, %v2456_v21  ;;  %v2750_v5 = vrot.slane %v109_v58, %v2444_v15  ;;  %v2756_v9 = vrot.slane %v557_v7, %v2454_v20  ;;  %v26_v40 = vld [vmem:[%s4379_s0 + $0x48] sm:$0xff] }
  0x29   :  { %4415 = vst [vmem:[#allocation21_spill] sm:$0xff] %v2730_v55  ;;  %4416 = vst [vmem:[#allocation22_spill] sm:$0xff] %v2735_v1  ;;  %v117_v55 = vrot.slane %v25_v25, %v2439_v13  ;;  %v2753_v1 = vrot.slane %v313_v3, %v2452_v19  ;;  %v565_v31 = vrot.slane %v25_v25, %v2448_v17 }
  0x2a   :  { %4417 = vst [vmem:[#allocation23_spill] sm:$0xff] %v2743_v26  ;;  %4418 = vst [vmem:[#allocation24_spill] sm:$0xff] %v2746_v48  ;;  %v2765_v30 = vrot.slane %v757_v43, %v2456_v21  ;;  %v2768_v58 = vrot.slane %v105_v24, %v2444_v15  ;;  %v113_v3 = vrot.slane %v25_v25, %v2444_v15 }
  0x2b   :  { %4419 = vst [vmem:[#allocation25_spill] sm:$0xff] %v2750_v5  ;;  %4420 = vst [vmem:[#allocation26_spill] sm:$0xff] %v2753_v1  ;;  %v2772_v7 = vrot.slane %v309_v4, %v2452_v19  ;;  %v2778_v1 = vrot.slane %v753_v35, %v2456_v21  ;;  %v561_v5 = vrot.slane %v25_v25, %v2454_v20 }
  0x2c   :  { %4421 = vst [vmem:[#allocation27_spill] sm:$0xff] %v2756_v9  ;;  %4422 = vst [vmem:[#allocation28_spill] sm:$0xff] %v2765_v30  ;;  %v2775_v9 = vrot.slane %v553_v2, %v2454_v20  ;;  %v2782_v34 = vrot.slane %v117_v55, %v2444_v15  ;;  %v321_v43 = vrot.slane %v25_v25, %v2446_v16 }
  0x2d   :  { %4423 = vst [vmem:[#allocation29_spill] sm:$0xff] %v2768_v58  ;;  %4424 = vst [vmem:[#allocation30_spill] sm:$0xff] %v2772_v7  ;;  %v765_v24 = vrot.slane %v25_v25, %v2450_v18  ;;  %v125_v58 = vrot.slane %v26_v40, %v2439_v13  ;;  %v2788_v4 = vrot.slane %v565_v31, %v2454_v20 }
  0x2e   :  { %4425 = vst [vmem:[#allocation31_spill] sm:$0xff] %v2775_v9  ;;  %4426 = vst [vmem:[#allocation32_spill] sm:$0xff] %v2778_v1  ;;  %v317_v2 = vrot.slane %v25_v25, %v2452_v19  ;;  %v761_v9 = vrot.slane %v25_v25, %v2456_v21  ;;  %v573_v35 = vrot.slane %v26_v40, %v2448_v17 }
  0x2f   :  { %4427 = vst [vmem:[#allocation33_spill] sm:$0xff] %v2782_v34  ;;  %4428 = vst [vmem:[#allocation34_spill] sm:$0xff] %v2788_v4  ;;  %v2794_v1 = vrot.slane %v113_v3, %v2444_v15  ;;  %v329_v55 = vrot.slane %v26_v40, %v2446_v16  ;;  %v121_v34 = vrot.slane %v26_v40, %v2444_v15  ;;  %v2810_v3 = vld [vmem:[%s4380_s1 + $0x10] sm:$0xf]  ;;  %s2395_s1 = smov 127  }
  0x30   :  { %v569_v7 = vrot.slane %v26_v40, %v2454_v20  ;;  %v2800_v30 = vrot.slane %v561_v5, %v2454_v20  ;;  %v773_v31 = vrot.slane %v26_v40, %v2450_v18  ;;  %v325_v4 = vrot.slane %v26_v40, %v2452_v19  ;;  %4431 = vst [vmem:[#allocation37_spill] sm:$0xff] %v2810_v3 }
  0x31   :  { %4429 = vst [vmem:[#allocation35_spill] sm:$0xff] %v2794_v1  ;;  %v769_v25 = vrot.slane %v26_v40, %v2456_v21  ;;  %v2813_v1 = vrot.slane %v321_v43, %v2452_v19  ;;  %v2816_v5 = vrot.slane %v765_v24, %v2456_v21  ;;  %v2824_v26 = vrot.slane %v317_v2, %v2452_v19 }
  0x32   :  { %4430 = vst [vmem:[#allocation36_spill] sm:$0xff] %v2800_v30  ;;  %v2819_v30 = vrot.slane %v125_v58, %v2444_v15  ;;  %v2827_v48 = vrot.slane %v761_v9, %v2456_v21  ;;  %v2830_v13 = vrot.slane %v573_v35, %v2454_v20  ;;  %v2835_v24 = vrot.slane %v329_v55, %v2452_v19 }
  0x33   :  { %v2838_v58 = vrot.slane %v121_v34, %v2444_v15  ;;  %v2841_v40 = vrot.slane %v569_v7, %v2454_v20  ;;  %v2848_v35 = vrot.slane %v773_v31, %v2456_v21  ;;  %v2854_v55 = vrot.slane %v769_v25, %v2456_v21 }
  0x34   :  { %4432 = vst [vmem:[#allocation38_spill] sm:$0xff] %v2819_v30  ;;  %4433 = vst [vmem:[#allocation39_spill] sm:$0xff] %v2830_v13  ;;  %v2851_v13 = vrot.slane %v325_v4, %v2452_v19 }
  0x35   :  { %4434 = vst [vmem:[#allocation40_spill] sm:$0xff] %v2835_v24  ;;  %4435 = vst [vmem:[#allocation41_spill] sm:$0xff] %v2838_v58 }
  0x36   :  { %4436 = vst [vmem:[#allocation42_spill] sm:$0xff] %v2841_v40  ;;  %4437 = vst [vmem:[#allocation43_spill] sm:$0xff] %v2848_v35 }
  0x37   :  { %4438 = vst [vmem:[#allocation44_spill] sm:$0xff] %v2851_v13  ;;  %4439 = vst [vmem:[#allocation45_spill] sm:$0xff] %v2854_v55 }
  0x81   :  { %v2843_v2 = vpop.permute.xlu0 %33 }
  0x82   :  { %v227_v34 = vmul.f32 %v2471_v32, %v2843_v2  ;;  %v675_v7 = vmul.f32 %v2480_v37, %v2843_v2  ;;  %v226_v43 = vmul.f32 %v2486_v39, %v2843_v2  ;;  %v674_v9 = vmul.f32 %v2495_v42, %v2843_v2 }
  0x83   :  { %v229_v31 = vmul.f32 %v2508_v47, %v2843_v2  ;;  %v677_v4 = vmul.f32 %v2516_v51, %v2843_v2  ;;  %v228_v25 = vmul.f32 %v2529_v59, %v2843_v2  ;;  %v676_v32 = vmul.f32 %v2538_v63, %v2843_v2 }
  0x84   :  { %v231_v37 = vmul.f32 %v2552_v6, %v2843_v2  ;;  %v679_v39 = vmul.f32 %v2559_v10, %v2843_v2  ;;  %v230_v42 = vmul.f32 %v2565_v14, %v2843_v2  ;;  %v678_v47 = vmul.f32 %v2577_v27, %v2843_v2 }
  0x85   :  { %v2882_v51 = vmul.f32 %v2595_v49, %v2843_v2  ;;  %v2886_v59 = vmul.f32 %v2601_v54, %v2843_v2  ;;  %v2890_v63 = vmul.f32 %v2608_v57, %v2843_v2  ;;  %v2894_v6 = vmul.f32 %v2620_v23, %v2843_v2 }
  0x86   :  { %v2896_v10 = vpop.permute.xlu0 %247  ;;  %v2900_v14 = vmul.f32 %v2632_v29, %v2843_v2  ;;  %v2904_v27 = vmul.f32 %v2638_v11, %v2843_v2  ;;  %v2908_v49 = vmul.f32 %v2652_v44, %v2843_v2  ;;  %v2912_v54 = vmul.f32 %v2665_v62, %v2843_v2 }
  0x87   :  { %v431_v57 = vmul.f32 %v2477_v36, %v2896_v10  ;;  %v875_v23 = vmul.f32 %v2483_v38, %v2896_v10  ;;  %v430_v29 = vmul.f32 %v2492_v41, %v2896_v10  ;;  %v874_v11 = vmul.f32 %v2505_v46, %v2896_v10  ;;  %v2930_v41 = vpop.permute.xlu1 %471 }
  0x88   :  { %v433_v44 = vmul.f32 %v2513_v50, %v2896_v10  ;;  %v877_v3 = vmul.f32 %v2519_v52, %v2896_v10  ;;  %v432_v62 = vmul.f32 %v2532_v60, %v2896_v10  ;;  %v876_v36 = vmul.f32 %v2541_v0, %v2896_v10 }
  0x89   :  { %v451_v55 = vadd.f32 %v431_v57, %v227_v34  ;;  %v895_v38 = vadd.f32 %v875_v23, %v675_v7  ;;  %v450_v40 = vadd.f32 %v430_v29, %v226_v43  ;;  %v894_v13 = vadd.f32 %v874_v11, %v674_v9 }
  0x8a   :  { %v453_v58 = vadd.f32 %v433_v44, %v229_v31  ;;  %v897_v46 = vadd.f32 %v877_v3, %v677_v4  ;;  %v452_v35 = vadd.f32 %v432_v62, %v228_v25  ;;  %v896_v24 = vadd.f32 %v876_v36, %v676_v32 }
  0x8b   :  { %v475_v50 = vadd.f32 %v2930_v41, %v451_v55  ;;  %v915_v52 = vadd.f32 %v895_v38, %v2930_v41  ;;  %v474_v30 = vadd.f32 %v2930_v41, %v450_v40  ;;  %v914_v60 = vadd.f32 %v894_v13, %v2930_v41 }
  0x8c   :  { %v477_v0 = vadd.f32 %v2930_v41, %v453_v58  ;;  %v917_v34 = vadd.f32 %v897_v46, %v2930_v41  ;;  %v476_v43 = vadd.f32 %v2930_v41, %v452_v35  ;;  %v916_v9 = vadd.f32 %v896_v24, %v2930_v41 }
  0x8d   :  { %v935_v7 = vmax.f32 %v475_v50, %v915_v52  ;;  %v934_v3 = vmax.f32 %v474_v30, %v914_v60  ;;  %v435_v31 = vmul.f32 %v2556_v8, %v2896_v10  ;;  %v879_v55 = vmul.f32 %v2562_v12, %v2896_v10 }
  0x8e   :  { %v937_v4 = vmax.f32 %v477_v0, %v917_v34  ;;  %v936_v40 = vmax.f32 %v476_v43, %v916_v9  ;;  %v434_v13 = vmul.f32 %v2568_v22, %v2896_v10  ;;  %v878_v58 = vmul.f32 %v2585_v33, %v2896_v10  ;;  %v4444_v0 = vld [vmem:[#allocation4_spill] sm:$0xff]  ;;  %v4445_v43 = vld [vmem:[#allocation5_spill] sm:$0xff] }
  0x8f   :  { %v955_v25 = vmax.f32 %v935_v7, 0.0  ;;  %v954_v35 = vmax.f32 %v934_v3, 0.0  ;;  %v455_v32 = vadd.f32 %v435_v31, %v231_v37  ;;  %v899_v24 = vadd.f32 %v879_v55, %v679_v39 }
  0x90   :  { %v957_v57 = vmax.f32 %v937_v4, 0.0  ;;  %v956_v30 = vmax.f32 %v936_v40, 0.0  ;;  %v454_v23 = vadd.f32 %v434_v13, %v230_v42  ;;  %v898_v29 = vadd.f32 %v878_v58, %v678_v47 }
  0x91   :  { %v4440_v8 = vrot.slane %v2502_v45, %v2452_v19  ;;  %v4441_v11 = vrot.slane %v2502_v45, %v2444_v15  ;;  %v479_v33 = vadd.f32 %v2930_v41, %v455_v32  ;;  %v919_v44 = vadd.f32 %v899_v24, %v2930_v41 }
  0x92   :  { %v4442_v37 = vrot.slane %v2502_v45, %v2456_v21  ;;  %v4443_v42 = vrot.slane %v2502_v45, %v2454_v20  ;;  %v478_v62 = vadd.f32 %v2930_v41, %v454_v23  ;;  %v918_v36 = vadd.f32 %v898_v29, %v2930_v41  ;;  %v4451_v29 = vld [vmem:[#allocation8_spill] sm:$0xff] }
  0x93   :  { %v2951_v12 = vmul.f32 %v4440_v8, %v955_v25  ;;  %v2956_v22 = vmul.f32 %v4441_v11, %v954_v35  ;;  %v939_v38 = vmax.f32 %v479_v33, %v919_v44  ;;  %v437_v46 = vmul.f32 %v2598_v53, %v2896_v10  ;;  %v4446_v53 = vld [vmem:[#allocation6_spill] sm:$0xff]  ;;  %v4452_v33 = vld [vmem:[#allocation9_spill] sm:$0xff] }
  0x94   :  { %v2963_v39 = vmul.f32 %v4442_v37, %v957_v57  ;;  %v2968_v47 = vmul.f32 %v4443_v42, %v956_v30  ;;  %v881_v50 = vmul.f32 %v2605_v56, %v2896_v10  ;;  %v938_v52 = vmax.f32 %v478_v62, %v918_v36  ;;  %v4450_v30 = vld [vmem:[#allocation7_spill] sm:$0xff]  ;;  %v4453_v37 = vld [vmem:[#allocation10_spill] sm:$0xff] }
  0x95   :  { %1099 = vrot.lane.b32.xlu1 %v2951_v12, %s2395_s1  ;;  %1097 = vrot.lane.b32.xlu0 %v2956_v22, %s2395_s1  ;;  %v436_v60 = vmul.f32 %v2611_v61, %v2896_v10  ;;  %v880_v34 = vmul.f32 %v4444_v0, %v2896_v10  ;;  %v439_v9 = vmul.f32 %v4445_v43, %v2896_v10  ;;  %v959_v7 = vmax.f32 %v939_v38, 0.0  ;;  %v4454_v62 = vld [vmem:[#allocation11_spill] sm:$0xff]  ;;  %v4455_v0 = vld [vmem:[#allocation12_spill] sm:$0xff]  ;;  %v4456_v43 = vld [vmem:[#allocation13_spill] sm:$0xff] }
  0x96   :  { %v457_v3 = vadd.f32 %v437_v46, %v2882_v51  ;;  %v901_v31 = vadd.f32 %v881_v50, %v2886_v59  ;;  %v883_v55 = vmul.f32 %v4446_v53, %v2896_v10  ;;  %v958_v4 = vmax.f32 %v938_v52, 0.0 }
  0x97   :  { %v456_v56 = vadd.f32 %v436_v60, %v2890_v63  ;;  %v900_v40 = vadd.f32 %v880_v34, %v2894_v6  ;;  %v459_v61 = vadd.f32 %v439_v9, %v2900_v14  ;;  %v4447_v51 = vrot.slane %v2502_v45, %v2446_v16  ;;  %v4448_v63 = vld [vmem:[#allocation3_spill] sm:$0xff] }
  0x98   :  { %v481_v13 = vadd.f32 %v2930_v41, %v457_v3  ;;  %v921_v58 = vadd.f32 %v901_v31, %v2930_v41  ;;  %v4449_v6 = vrot.slane %v2502_v45, %v4448_v63  ;;  %v903_v57 = vadd.f32 %v883_v55, %v2904_v27 }
  0x99   :  { %1103 = vrot.lane.b32.xlu1 %v2963_v39, %s2395_s1  ;;  %1101 = vrot.lane.b32.xlu0 %v2968_v47, %s2395_s1  ;;  %v3000_v59 = vmul.f32 %v4447_v51, %v959_v7  ;;  %v480_v14 = vadd.f32 %v2930_v41, %v456_v56  ;;  %v920_v35 = vadd.f32 %v900_v40, %v2930_v41  ;;  %v4459_v40 = vld [vmem:[#allocation14_spill] sm:$0xff] }
  0x9a   :  { %v3007_v25 = vmul.f32 %v4449_v6, %v958_v4  ;;  %v483_v32 = vadd.f32 %v2930_v41, %v459_v61  ;;  %v941_v24 = vmax.f32 %v481_v13, %v921_v58  ;;  %v438_v23 = vmul.f32 %v4450_v30, %v2896_v10  ;;  %v4460_v58 = vld [vmem:[#allocation15_spill] sm:$0xff]  ;;  %v4463_v30 = vld [vmem:[#allocation18_spill] sm:$0xff] }
  0x9b   :  { %v882_v8 = vmul.f32 %v4451_v29, %v2896_v10  ;;  %v940_v11 = vmax.f32 %v480_v14, %v920_v35  ;;  %v237_v44 = vmul.f32 %v4452_v33, %v2843_v2  ;;  %v441_v42 = vmul.f32 %v4453_v37, %v2896_v10  ;;  %v4461_v14 = vld [vmem:[#allocation16_spill] sm:$0xff] }
  0x9c   :  { %v685_v36 = vmul.f32 %v4454_v62, %v2843_v2  ;;  %v961_v27 = vmax.f32 %v941_v24, 0.0  ;;  %v923_v38 = vadd.f32 %v903_v57, %v2930_v41  ;;  %v458_v46 = vadd.f32 %v438_v23, %v2908_v49  ;;  %v4462_v24 = vld [vmem:[#allocation17_spill] sm:$0xff] }
  0x9d   :  { %1107 = vrot.lane.b32.xlu1 %v3000_v59, %s2395_s1  ;;  %1105 = vrot.lane.b32.xlu0 %v3007_v25, %s2395_s1  ;;  %v902_v50 = vadd.f32 %v882_v8, %v2912_v54  ;;  %v960_v52 = vmax.f32 %v940_v11, 0.0  ;;  %v461_v60 = vadd.f32 %v441_v42, %v237_v44  ;;  %v885_v34 = vmul.f32 %v4455_v0, %v2896_v10  ;;  %v4465_v44 = vld [vmem:[#allocation19_spill] sm:$0xff] }
  0x9e   :  { %v236_v9 = vmul.f32 %v4456_v43, %v2843_v2  ;;  %v4457_v7 = vrot.slane %v2502_v45, %v2450_v18  ;;  %v943_v31 = vmax.f32 %v483_v32, %v923_v38  ;;  %v482_v53 = vadd.f32 %v2930_v41, %v458_v46 }
  0x9f   :  { %v922_v49 = vadd.f32 %v902_v50, %v2930_v41  ;;  %v4458_v54 = vrot.slane %v2502_v45, %v2448_v17  ;;  %v485_v4 = vadd.f32 %v2930_v41, %v461_v60  ;;  %v905_v56 = vadd.f32 %v885_v34, %v685_v36  ;;  %v4468_v60 = vld [vmem:[#allocation21_spill] sm:$0xff]  ;;  %v4469_v34 = vld [vmem:[#allocation22_spill] sm:$0xff] }
  0xa0   :  { %v3037_v3 = vmul.f32 %v4457_v7, %v961_v27  ;;  %v440_v61 = vmul.f32 %v4459_v40, %v2896_v10  ;;  %v963_v51 = vmax.f32 %v943_v31, 0.0  ;;  %v684_v6 = vmul.f32 %v4460_v58, %v2843_v2  ;;  %v4466_v27 = vld [vmem:[#allocation20_spill] sm:$0xff] }
  0xa1   :  { %v3044_v55 = vmul.f32 %v4458_v54, %v960_v52  ;;  %v942_v13 = vmax.f32 %v482_v53, %v922_v49  ;;  %v884_v35 = vmul.f32 %v4461_v14, %v2896_v10  ;;  %v925_v45 = vadd.f32 %v905_v56, %v2930_v41  ;;  %v4470_v53 = vld [vmem:[#allocation23_spill] sm:$0xff]  ;;  %v4471_v56 = vld [vmem:[#allocation24_spill] sm:$0xff]  ;;  %v4474_v14 = vld [vmem:[#allocation26_spill] sm:$0xff] }
  0xa2   :  { %1111 = vrot.lane.b32.xlu1 %v3037_v3, %s2395_s1  ;;  %v460_v32 = vadd.f32 %v440_v61, %v236_v9  ;;  %v239_v57 = vmul.f32 %v4462_v24, %v2843_v2  ;;  %v443_v23 = vmul.f32 %v4463_v30, %v2896_v10  ;;  %v4464_v29 = vrot.slane %v2629_v28, %v2452_v19  ;;  %v4472_v61 = vld [vmem:[#allocation25_spill] sm:$0xff] }
  0xa3   :  { %1109 = vrot.lane.b32.xlu0 %v3044_v55, %s2395_s1  ;;  %v962_v11 = vmax.f32 %v942_v13, 0.0  ;;  %v904_v33 = vadd.f32 %v884_v35, %v684_v6  ;;  %v687_v37 = vmul.f32 %v4465_v44, %v2843_v2  ;;  %v945_v42 = vmax.f32 %v485_v4, %v925_v45  ;;  %v4475_v45 = vld [vmem:[#allocation27_spill] sm:$0xff]  ;;  %v4477_v44 = vld [vmem:[#allocation29_spill] sm:$0xff] }
  0xa4   :  { %v3065_v8 = vmul.f32 %v4464_v29, %v963_v51  ;;  %v484_v62 = vadd.f32 %v2930_v41, %v460_v32  ;;  %v463_v36 = vadd.f32 %v443_v23, %v239_v57  ;;  %v887_v38 = vmul.f32 %v4466_v27, %v2896_v10  ;;  %v4476_v23 = vld [vmem:[#allocation28_spill] sm:$0xff] }
  0xa5   :  { %v4467_v46 = vrot.slane %v2629_v28, %v2444_v15  ;;  %v924_v52 = vadd.f32 %v904_v33, %v2930_v41  ;;  %v238_v0 = vmul.f32 %v4468_v60, %v2843_v2  ;;  %v442_v43 = vmul.f32 %v4469_v34, %v2896_v10 }
  0xa6   :  { %1115 = vrot.lane.b32.xlu1 %v3065_v8, %s2395_s1  ;;  %v965_v9 = vmax.f32 %v945_v42, 0.0  ;;  %v487_v7 = vadd.f32 %v2930_v41, %v463_v36  ;;  %v907_v31 = vadd.f32 %v887_v38, %v687_v37  ;;  %v686_v49 = vmul.f32 %v4470_v53, %v2843_v2  ;;  %v4478_v42 = vld [vmem:[#allocation30_spill] sm:$0xff] }
  0xa7   :  { %v3077_v50 = vmul.f32 %v4467_v46, %v962_v11  ;;  %v944_v54 = vmax.f32 %v484_v62, %v924_v52  ;;  %v462_v4 = vadd.f32 %v442_v43, %v238_v0  ;;  %v886_v40 = vmul.f32 %v4471_v56, %v2896_v10  ;;  %v4480_v52 = vld [vmem:[#allocation31_spill] sm:$0xff] }
  0xa8   :  { %v241_v51 = vmul.f32 %v4472_v61, %v2843_v2  ;;  %v4473_v13 = vrot.slane %v2629_v28, %v2456_v21  ;;  %v927_v6 = vadd.f32 %v907_v31, %v2930_v41  ;;  %v445_v35 = vmul.f32 %v4474_v14, %v2896_v10 }
  0xa9   :  { %1113 = vrot.lane.b32.xlu0 %v3077_v50, %s2395_s1  ;;  %v689_v32 = vmul.f32 %v4475_v45, %v2843_v2  ;;  %v964_v24 = vmax.f32 %v944_v54, 0.0  ;;  %v486_v57 = vadd.f32 %v2930_v41, %v462_v4  ;;  %v906_v30 = vadd.f32 %v886_v40, %v686_v49  ;;  %v4482_v49 = vld [vmem:[#allocation33_spill] sm:$0xff] }
  0xaa   :  { %v3096_v58 = vmul.f32 %v4473_v13, %v965_v9  ;;  %v889_v29 = vmul.f32 %v4476_v23, %v2896_v10  ;;  %v947_v11 = vmax.f32 %v487_v7, %v927_v6  ;;  %v465_v33 = vadd.f32 %v445_v35, %v241_v51  ;;  %v4481_v9 = vld [vmem:[#allocation32_spill] sm:$0xff]  ;;  %v4484_v13 = vld [vmem:[#allocation34_spill] sm:$0xff] }
  0xab   :  { %v240_v37 = vmul.f32 %v4477_v44, %v2843_v2  ;;  %v444_v62 = vmul.f32 %v4478_v42, %v2896_v10  ;;  %v4479_v36 = vrot.slane %v2629_v28, %v2454_v20  ;;  %v926_v38 = vadd.f32 %v906_v30, %v2930_v41  ;;  %v4486_v30 = vld [vmem:[#allocation36_spill] sm:$0xff] }
  0xac   :  { %1119 = vrot.lane.b32.xlu1 %v3096_v58, %s2395_s1  ;;  %v909_v46 = vadd.f32 %v889_v29, %v689_v32  ;;  %v688_v60 = vmul.f32 %v4480_v52, %v2843_v2  ;;  %v967_v0 = vmax.f32 %v947_v11, 0.0  ;;  %v489_v34 = vadd.f32 %v2930_v41, %v465_v33  ;;  %v4490_v52 = vld [vmem:[#allocation40_spill] sm:$0xff] }
  0xad   :  { %v3115_v27 = vmul.f32 %v4479_v36, %v964_v24  ;;  %v464_v43 = vadd.f32 %v444_v62, %v240_v37  ;;  %v888_v7 = vmul.f32 %v4481_v9, %v2896_v10  ;;  %v946_v31 = vmax.f32 %v486_v57, %v926_v38  ;;  %v4488_v36 = vld [vmem:[#allocation38_spill] sm:$0xff] }
  0xae   :  { %v929_v53 = vadd.f32 %v909_v46, %v2930_v41  ;;  %v243_v54 = vmul.f32 %v4482_v49, %v2843_v2  ;;  %v447_v4 = vmul.f32 %v2813_v1, %v2896_v10  ;;  %v4483_v56 = vrot.slane %v2629_v28, %v2446_v16  ;;  %v4485_v16 = vld [vmem:[#allocation35_spill] sm:$0xff]  ;;  %v4493_v49 = vld [vmem:[#allocation41_spill] sm:$0xff] }
  0xaf   :  { %1117 = vrot.lane.b32.xlu0 %v3115_v27, %s2395_s1  ;;  %v488_v61 = vadd.f32 %v2930_v41, %v464_v43  ;;  %v908_v51 = vadd.f32 %v888_v7, %v688_v60  ;;  %v691_v6 = vmul.f32 %v4484_v13, %v2843_v2  ;;  %v966_v14 = vmax.f32 %v946_v31, 0.0  ;;  %v4492_v7 = vld [vmem:[#allocation43_spill] sm:$0xff] }
  0xb0   :  { %v3133_v40 = vmul.f32 %v4483_v56, %v967_v0  ;;  %v949_v35 = vmax.f32 %v489_v34, %v929_v53  ;;  %v467_v45 = vadd.f32 %v447_v4, %v243_v54  ;;  %v891_v32 = vmul.f32 %v2816_v5, %v2896_v10  ;;  %v4491_v0 = vld [vmem:[#allocation39_spill] sm:$0xff]  ;;  %v4494_v4 = vld [vmem:[#allocation44_spill] sm:$0xff] }
  0xb1   :  { %v928_v1 = vadd.f32 %v908_v51, %v2930_v41  ;;  %v242_v24 = vmul.f32 %v4485_v16, %v2843_v2  ;;  %v446_v57 = vmul.f32 %v2824_v26, %v2896_v10  ;;  %v690_v23 = vmul.f32 %v4486_v30, %v2843_v2  ;;  %v4497_v16 = vld [vmem:[#allocation45_spill] sm:$0xff] }
  0xb2   :  { %1123 = vrot.lane.b32.xlu1 %v3133_v40, %s2395_s1  ;;  %v4487_v29 = vrot.slane %v2629_v28, %v4448_v63  ;;  %v969_v5 = vmax.f32 %v949_v35, 0.0  ;;  %v491_v33 = vadd.f32 %v2930_v41, %v467_v45  ;;  %v911_v44 = vadd.f32 %v891_v32, %v691_v6 }
  0xb3   :  { %v948_v37 = vmax.f32 %v488_v61, %v928_v1  ;;  %v466_v42 = vadd.f32 %v446_v57, %v242_v24  ;;  %v890_v62 = vmul.f32 %v2827_v48, %v2896_v10  ;;  %v245_v26 = vmul.f32 %v4488_v36, %v2843_v2 }
  0xb4   :  { %v3152_v11 = vmul.f32 %v4487_v29, %v966_v14  ;;  %v4489_v63 = vrot.slane %v2629_v28, %v2450_v18  ;;  %v931_v46 = vadd.f32 %v911_v44, %v2930_v41  ;;  %v449_v60 = vmul.f32 %v4490_v52, %v2896_v10  ;;  %v4496_v14 = vld [vmem:[#allocation42_spill] sm:$0xff] }
  0xb5   :  { %v693_v34 = vmul.f32 %v4491_v0, %v2843_v2  ;;  %v968_v48 = vmax.f32 %v948_v37, 0.0  ;;  %v490_v43 = vadd.f32 %v2930_v41, %v466_v42  ;;  %v910_v9 = vadd.f32 %v890_v62, %v690_v23  ;;  %v3224_v0 = vpop.permute.xlu1 %1163 }
  0xb6   :  { %1121 = vrot.lane.b32.xlu0 %v3152_v11, %s2395_s1  ;;  %v3164_v38 = vmul.f32 %v4489_v63, %v969_v5  ;;  %v893_v31 = vmul.f32 %v4492_v7, %v2896_v10  ;;  %v951_v18 = vmax.f32 %v491_v33, %v931_v46  ;;  %v469_v53 = vadd.f32 %v449_v60, %v245_v26 }
  0xb7   :  { %v244_v54 = vmul.f32 %v4493_v49, %v2843_v2  ;;  %v448_v56 = vmul.f32 %v4494_v4, %v2896_v10  ;;  %v4495_v61 = vrot.slane %v2629_v28, %v2448_v17  ;;  %v930_v13 = vadd.f32 %v910_v9, %v2930_v41  ;;  %v4498_v17 = vld [vmem:[#allocation37_spill] sm:$0xff] }
  0xb8   :  { %1127 = vrot.lane.b32.xlu1 %v3164_v38, %s2395_s1  ;;  %v913_v6 = vadd.f32 %v893_v31, %v693_v34  ;;  %v692_v35 = vmul.f32 %v4496_v14, %v2843_v2  ;;  %v971_v45 = vmax.f32 %v951_v18, 0.0  ;;  %v493_v32 = vadd.f32 %v2930_v41, %v469_v53  ;;  %v3238_v53 = vpop.permute.xlu0 %1291 }
  0xb9   :  { %v3183_v51 = vmul.f32 %v4495_v61, %v968_v48  ;;  %v468_v1 = vadd.f32 %v448_v56, %v244_v54  ;;  %v892_v24 = vmul.f32 %v4497_v16, %v2896_v10  ;;  %v950_v57 = vmax.f32 %v490_v43, %v930_v13  ;;  %v3229_v43 = vpop.permute.xlu1 %1267 }
  0xba   :  { %v1044_v28 = vrot.slane %v4498_v17, %v2444_v15  ;;  %v933_v30 = vadd.f32 %v913_v6, %v2930_v41  ;;  %v4499_v23 = vrot.slane %v4498_v17, %v2452_v19  ;;  %v1056_v10 = vrot.slane %v4498_v17, %v2456_v21 }
  0xbb   :  { %1125 = vrot.lane.b32.xlu0 %v3183_v51, %s2395_s1  ;;  %v492_v29 = vadd.f32 %v2930_v41, %v468_v1  ;;  %v912_v5 = vadd.f32 %v892_v24, %v692_v35  ;;  %v970_v33 = vmax.f32 %v950_v57, 0.0  ;;  %v1052_v26 = vrot.slane %v4498_v17, %v2454_v20 }
  0xbc   :  { %v3199_v2 = vmul.f32 %v4499_v23, %v971_v45  ;;  %v953_v44 = vmax.f32 %v493_v32, %v933_v30  ;;  %v4501_v60 = vmov 7   ;;  %v1169_v34 = vrot.slane %v2956_v22, %v2444_v15  ;;  %v3259_v24 = vpop.permute.xlu0 %1539 }
  0xbd   :  { %v932_v37 = vadd.f32 %v912_v5, %v2930_v41  ;;  %v3207_v42 = vmul.f32 %v1044_v28, %v970_v33  ;;  %v4500_v41 = vld [vmem:[#allocation2_spill] sm:$0xff]  ;;  %v1297_v9 = vrot.slane %v2956_v22, %v2452_v19  ;;  %v1173_v7 = vrot.slane %v2951_v12, %v2444_v15  ;;  %v3244_v56 = vpop.permute.xlu1 %1415 }
  0xbe   :  { %1131 = vrot.lane.b32.xlu1 %v3199_v2, %s2395_s1  ;;  %v973_v62 = vmax.f32 %v953_v44, 0.0  ;;  %v1246_v48 = vmul.f32 %v1169_v34, %v3224_v0  ;;  %v1177_v31 = vrot.slane %v2968_v47, %v2444_v15  ;;  %v1421_v54 = vrot.slane %v2956_v22, %v2454_v20 }
  0xbf   :  { %v952_v36 = vmax.f32 %v492_v29, %v932_v37  ;;  %1129 = vrot.lane.b32.xlu0 %v3207_v42, %s2395_s1  ;;  %v1374_v49 = vmul.f32 %v1297_v9, %v3238_v53  ;;  %v1247_v4 = vmul.f32 %v1173_v7, %v3224_v0  ;;  %v1181_v13 = vrot.slane %v2963_v39, %v2444_v15 }
  0xc0   :  { %v3213_v63 = vmul.f32 %v1056_v10, %v973_v62  ;;  %v1270_v18 = vadd.f32 %v3229_v43, %v1246_v48  ;;  %v1248_v61 = vmul.f32 %v1177_v31, %v3224_v0  ;;  %v1301_v14 = vrot.slane %v2951_v12, %v2452_v19 }
  0xc1   :  { %v972_v46 = vmax.f32 %v952_v36, 0.0  ;;  %v1305_v35 = vrot.slane %v2968_v47, %v2452_v19  ;;  %v1498_v45 = vmul.f32 %v1421_v54, %v3244_v56  ;;  %v1545_v32 = vrot.slane %v2956_v22, %v2456_v21 }
  0xc2   :  { %1135 = vrot.lane.b32.xlu1 %v3213_v63, %s2395_s1  ;;  %v1394_v6 = vadd.f32 %v1374_v49, %v1270_v18  ;;  %v1271_v1 = vadd.f32 %v3229_v43, %v1247_v4  ;;  %v1185_v16 = vrot.slane %v3007_v25, %v2444_v15  ;;  %v1272_v57 = vadd.f32 %v3229_v43, %v1248_v61 }
  0xc3   :  { %v3217_v52 = vmul.f32 %v1052_v26, %v972_v46  ;;  %v1249_v17 = vmul.f32 %v1181_v13, %v3224_v0  ;;  %v1375_v30 = vmul.f32 %v1301_v14, %v3238_v53  ;;  %v1425_v23 = vrot.slane %v2951_v12, %v2454_v20 }
  0xc4   :  { %v1518_v28 = vadd.f32 %v1498_v45, %v1394_v6  ;;  %v1189_v22 = vrot.slane %v3000_v59, %v2444_v15  ;;  %v1376_v29 = vmul.f32 %v1305_v35, %v3238_v53  ;;  %v1429_v5 = vrot.slane %v2968_v47, %v2454_v20 }
  0xc5   :  { %1133 = vrot.lane.b32.xlu0 %v3217_v52, %s2395_s1  ;;  %v1309_v33 = vrot.slane %v2963_v39, %v2452_v19  ;;  %v1622_v44 = vmul.f32 %v1545_v32, %v3259_v24  ;;  %v1395_v10 = vadd.f32 %v1375_v30, %v1271_v1  ;;  %v1250_v37 = vmul.f32 %v1185_v16, %v3224_v0 }
  0xc6   :  { %2035 = vperm.xlu1 %2384, %v4500_v41   ;;  %v1193_v62 = vrot.slane %v3044_v55, %v2444_v15  ;;  %v4502_v36 = vlaneseq  ;;  %v1396_v46 = vadd.f32 %v1376_v29, %v1272_v57  ;;  %v1499_v48 = vmul.f32 %v1425_v23, %v3244_v56 }
  0xc7   :  { %v3283_v34 = vadd.f32 %v1622_v44, %v1518_v28  ;;  %v1313_v9 = vrot.slane %v3007_v25, %v2452_v19  ;;  %v1251_v7 = vmul.f32 %v1189_v22, %v3224_v0  ;;  %v1500_v31 = vmul.f32 %v1429_v5, %v3244_v56 }
  0xc8   :  { %v3278_v26 = vand.u32 127, %v4502_v36  ;;  %v1553_v18 = vrot.slane %v2968_v47, %v2456_v21  ;;  %v1377_v49 = vmul.f32 %v1309_v33, %v3238_v53  ;;  %v1519_v54 = vadd.f32 %v1499_v48, %v1395_v10 }
  0xc9   :  { %1911 = vperm.xlu0 %2383, %v4500_v41   ;;  %v1549_v41 = vrot.slane %v2951_v12, %v2456_v21  ;;  %v1433_v12 = vrot.slane %v2963_v39, %v2454_v20  ;;  %v1274_v4 = vadd.f32 %v3229_v43, %v1250_v37  ;;  %v1252_v61 = vmul.f32 %v1193_v62, %v3224_v0 }
  0xca   :  { %v1317_v13 = vrot.slane %v3000_v59, %v2452_v19  ;;  %v1520_v6 = vadd.f32 %v1500_v31, %v1396_v46  ;;  %v1197_v47 = vrot.slane %v3037_v3, %v2444_v15  ;;  %v1378_v45 = vmul.f32 %v1313_v9, %v3238_v53 }
  0xcb   :  { %v1623_v14 = vmul.f32 %v1549_v41, %v3259_v24  ;;  %v1437_v32 = vrot.slane %v3007_v25, %v2454_v20  ;;  %v1275_v1 = vadd.f32 %v3229_v43, %v1251_v7  ;;  %v1321_v16 = vrot.slane %v3044_v55, %v2452_v19 }
  0xcc   :  { %v1624_v57 = vmul.f32 %v1553_v18, %v3259_v24  ;;  %v1557_v28 = vrot.slane %v2963_v39, %v2456_v21  ;;  %v1201_v30 = vrot.slane %v3077_v50, %v2444_v15  ;;  %v1398_v23 = vadd.f32 %v1378_v45, %v1274_v4 }
  0xcd   :  { %2385 = vset.pattern.permute.xlu0 %v4501_v60  ;;  %v1273_v60 = vadd.f32 %v3229_v43, %v1249_v17  ;;  %v1501_v17 = vmul.f32 %v1433_v12, %v3244_v56  ;;  %v1276_v22 = vadd.f32 %v3229_v43, %v1252_v61  ;;  %v1379_v29 = vmul.f32 %v1317_v13, %v3238_v53 }
  0xce   :  { %v1441_v5 = vrot.slane %v3000_v59, %v2454_v20  ;;  %v3318_v33 = vadd.f32 %v1623_v14, %v1519_v54  ;;  %v1561_v10 = vrot.slane %v3007_v25, %v2456_v21  ;;  %v1253_v37 = vmul.f32 %v1197_v47, %v3224_v0  ;;  %v3333_v25 = vpop.permute.xlu1 %1663 }
  0xcf   :  { %v1397_v35 = vadd.f32 %v1377_v49, %v1273_v60  ;;  %v1502_v39 = vmul.f32 %v1437_v32, %v3244_v56  ;;  %v1380_v62 = vmul.f32 %v1321_v16, %v3238_v53  ;;  %v1399_v36 = vadd.f32 %v1379_v29, %v1275_v1 }
  0xd0   :  { %v1445_v46 = vrot.slane %v3044_v55, %v2454_v20  ;;  %v3327_v41 = vadd.f32 %v1624_v57, %v1520_v6  ;;  %v1625_v60 = vmul.f32 %v1557_v28, %v3259_v24  ;;  %v1254_v48 = vmul.f32 %v1201_v30, %v3224_v0 }
  0xd1   :  { %v1521_v44 = vadd.f32 %v1501_v17, %v1397_v35  ;;  %v1325_v9 = vrot.slane %v3037_v3, %v2452_v19  ;;  %v1522_v7 = vadd.f32 %v1502_v39, %v1398_v23  ;;  %v1400_v31 = vadd.f32 %v1380_v62, %v1276_v22 }
  0xd2   :  { %v1503_v18 = vmul.f32 %v1441_v5, %v3244_v56  ;;  %v1565_v49 = vrot.slane %v3000_v59, %v2456_v21  ;;  %v1626_v12 = vmul.f32 %v1561_v10, %v3259_v24  ;;  %v1277_v4 = vadd.f32 %v3229_v43, %v1253_v37  ;;  %v3365_v22 = vpop.permute.xlu1 %1787 }
  0xd3   :  { %v3339_v54 = vadd.f32 %v1625_v60, %v1521_v44  ;;  %v1329_v61 = vrot.slane %v3077_v50, %v2452_v19  ;;  %v1504_v13 = vmul.f32 %v1445_v46, %v3244_v56  ;;  %v1569_v14 = vrot.slane %v3044_v55, %v2456_v21 }
  0xd4   :  { %v1523_v6 = vadd.f32 %v1503_v18, %v1399_v36  ;;  %v1205_v35 = vrot.slane %v3065_v8, %v2444_v15  ;;  %v1278_v59 = vadd.f32 %v3229_v43, %v1254_v48  ;;  %v1381_v47 = vmul.f32 %v1325_v9, %v3238_v53 }
  0xd5   :  { %v1449_v45 = vrot.slane %v3037_v3, %v2454_v20  ;;  %v1209_v32 = vrot.slane %v3115_v27, %v2444_v15  ;;  %v3355_v1 = vadd.f32 %v1626_v12, %v1522_v7  ;;  %v1524_v16 = vadd.f32 %v1504_v13, %v1400_v31 }
  0xd6   :  { %v1627_v57 = vmul.f32 %v1565_v49, %v3259_v24  ;;  %v1213_v55 = vrot.slane %v3096_v58, %v2444_v15  ;;  %v1382_v17 = vmul.f32 %v1329_v61, %v3238_v53  ;;  %v1401_v28 = vadd.f32 %v1381_v47, %v1277_v4 }
  0xd7   :  { %v1453_v30 = vrot.slane %v3077_v50, %v2454_v20  ;;  %v1217_v23 = vrot.slane %v3152_v11, %v2444_v15  ;;  %v1628_v29 = vmul.f32 %v1569_v14, %v3259_v24  ;;  %v1573_v5 = vrot.slane %v3037_v3, %v2456_v21 }
  0xd8   :  { %v1577_v44 = vrot.slane %v3077_v50, %v2456_v21  ;;  %v1255_v10 = vmul.f32 %v1205_v35, %v3224_v0  ;;  %v3373_v37 = vadd.f32 %v1627_v57, %v1523_v6  ;;  %v1402_v39 = vadd.f32 %v1382_v17, %v1278_v59 }
  0xd9   :  { %v1505_v62 = vmul.f32 %v1449_v45, %v3244_v56  ;;  %v1256_v36 = vmul.f32 %v1209_v32, %v3224_v0  ;;  %v3377_v46 = vadd.f32 %v1628_v29, %v1524_v16  ;;  %v1333_v60 = vrot.slane %v3065_v8, %v2452_v19 }
  0xda   :  { %v1337_v3 = vrot.slane %v3115_v27, %v2452_v19  ;;  %v1257_v48 = vmul.f32 %v1213_v55, %v3224_v0  ;;  %v1506_v50 = vmul.f32 %v1453_v30, %v3244_v56  ;;  %v1457_v7 = vrot.slane %v3065_v8, %v2454_v20 }
  0xdb   :  { %v1525_v9 = vadd.f32 %v1505_v62, %v1401_v28  ;;  %v1258_v31 = vmul.f32 %v1217_v23, %v3224_v0  ;;  %v1629_v18 = vmul.f32 %v1573_v5, %v3259_v24  ;;  %v1630_v49 = vmul.f32 %v1577_v44, %v3259_v24 }
  0xdc   :  { %v1279_v12 = vadd.f32 %v3229_v43, %v1255_v10  ;;  %v1341_v4 = vrot.slane %v3096_v58, %v2452_v19  ;;  %v1526_v61 = vadd.f32 %v1506_v50, %v1402_v39  ;;  %v1280_v13 = vadd.f32 %v3229_v43, %v1256_v36 }
  0xdd   :  { %v1345_v6 = vrot.slane %v3152_v11, %v2452_v19  ;;  %v1221_v14 = vrot.slane %v3133_v40, %v2444_v15  ;;  %v1383_v47 = vmul.f32 %v1333_v60, %v3238_v53  ;;  %v1384_v45 = vmul.f32 %v1337_v3, %v3238_v53 }
  0xde   :  { %v1461_v32 = vrot.slane %v3115_v27, %v2454_v20  ;;  %v1281_v16 = vadd.f32 %v3229_v43, %v1257_v48  ;;  %v3407_v57 = vadd.f32 %v1629_v18, %v1525_v9  ;;  %v1507_v55 = vmul.f32 %v1457_v7, %v3244_v56 }
  0xdf   :  { %v1282_v17 = vadd.f32 %v3229_v43, %v1258_v31  ;;  %v1225_v28 = vrot.slane %v3183_v51, %v2444_v15  ;;  %v1403_v30 = vadd.f32 %v1383_v47, %v1279_v12  ;;  %v1581_v23 = vrot.slane %v3065_v8, %v2456_v21 }
  0xe0   :  { %v1385_v29 = vmul.f32 %v1341_v4, %v3238_v53  ;;  %v1465_v5 = vrot.slane %v3096_v58, %v2454_v20  ;;  %v1404_v44 = vadd.f32 %v1384_v45, %v1280_v13  ;;  %v1386_v10 = vmul.f32 %v1345_v6, %v3238_v53 }
  0xe1   :  { %v1469_v39 = vrot.slane %v3152_v11, %v2454_v20  ;;  %v1259_v62 = vmul.f32 %v1221_v14, %v3224_v0  ;;  %v1585_v8 = vrot.slane %v3115_v27, %v2456_v21  ;;  %v1589_v48 = vrot.slane %v3096_v58, %v2456_v21 }
  0xe2   :  { %v1405_v3 = vadd.f32 %v1385_v29, %v1281_v16  ;;  %v1593_v50 = vrot.slane %v3152_v11, %v2456_v21  ;;  %v1508_v9 = vmul.f32 %v1461_v32, %v3244_v56  ;;  %v1406_v7 = vadd.f32 %v1386_v10, %v1282_v17 }
  0xe3   :  { %v1260_v31 = vmul.f32 %v1225_v28, %v3224_v0  ;;  %v1349_v18 = vrot.slane %v3133_v40, %v2452_v19  ;;  %v3436_v12 = vadd.f32 %v1630_v49, %v1526_v61  ;;  %v1631_v4 = vmul.f32 %v1581_v23, %v3259_v24 }
  0xe4   :  { %v1509_v27 = vmul.f32 %v1465_v5, %v3244_v56  ;;  %v1353_v58 = vrot.slane %v3183_v51, %v2452_v19  ;;  %v1527_v13 = vadd.f32 %v1507_v55, %v1403_v30  ;;  %v1528_v6 = vadd.f32 %v1508_v9, %v1404_v44 }
  0xe5   :  { %4503 = vst [vmem:[#allocation4_spill] sm:$0xff] %v3436_v12  ;;  %v1510_v11 = vmul.f32 %v1469_v39, %v3244_v56  ;;  %v1283_v14 = vadd.f32 %v3229_v43, %v1259_v62  ;;  %v1632_v49 = vmul.f32 %v1585_v8, %v3259_v24  ;;  %v1633_v32 = vmul.f32 %v1589_v48, %v3259_v24 }
  0xe6   :  { %v1529_v61 = vadd.f32 %v1509_v27, %v1405_v3  ;;  %v1634_v16 = vmul.f32 %v1593_v50, %v3259_v24  ;;  %v1284_v28 = vadd.f32 %v3229_v43, %v1260_v31  ;;  %v1387_v55 = vmul.f32 %v1349_v18, %v3238_v53 }
  0xe7   :  { %v1530_v17 = vadd.f32 %v1510_v11, %v1406_v7  ;;  %v1473_v30 = vrot.slane %v3133_v40, %v2454_v20  ;;  %v1388_v23 = vmul.f32 %v1353_v58, %v3238_v53  ;;  %v1229_v29 = vrot.slane %v3164_v38, %v2444_v15 }
  0xe8   :  { %v1233_v5 = vrot.slane %v3207_v42, %v2444_v15  ;;  %v1245_v44 = vrot.slane %v3213_v63, %v2444_v15  ;;  %vm1139_vm0 = vcmp.lt.s32.totalorder %v3278_v26, 127  ;;  %v1407_v10 = vadd.f32 %v1387_v55, %v1283_v14 }
  0xe9   :  { %v1477_v39 = vrot.slane %v3183_v51, %v2454_v20  ;;  %v1237_v62 = vrot.slane %v3199_v2, %v2444_v15  ;;  %v1241_v8 = vrot.slane %v3217_v52, %v2444_v15  ;;  %v3471_v48 = vadd.f32 %v1631_v4, %v1527_v13 }
  0xea   :  { %v3473_v50 = vadd.f32 %v1632_v49, %v1528_v6  ;;  %v3475_v9 = vadd.f32 %v1633_v32, %v1529_v61  ;;  %v1597_v7 = vrot.slane %v3133_v40, %v2456_v21  ;;  %v3481_v18 = vadd.f32 %v1634_v16, %v1530_v17 }
  0xeb   :  { %4504 = vst [vmem:[#allocation5_spill] sm:$0xff] %v3471_v48  ;;  %v1408_v27 = vadd.f32 %v1388_v23, %v1284_v28  ;;  %v1511_v58 = vmul.f32 %v1473_v30, %v3244_v56  ;;  %v1601_v11 = vrot.slane %v3183_v51, %v2456_v21  ;;  %v1261_v4 = vmul.f32 %v1229_v29, %v3224_v0 }
  0xec   :  { %4505 = vst [vmem:[#allocation6_spill] sm:$0xff] %v3473_v50  ;;  %4506 = vst [vmem:[#allocation3_spill] sm:$0xff] %v3475_v9  ;;  %v1262_v13 = vmul.f32 %v1233_v5, %v3224_v0  ;;  %v1357_v6 = vrot.slane %v3164_v38, %v2452_v19  ;;  %v1265_v14 = vmul.f32 %v1245_v44, %v3224_v0  ;;  %vm2278_vm1 = vcmp.lt.s32.totalorder %v3278_v26, 126 }
  0xed   :  { %v1512_v40 = vmul.f32 %v1477_v39, %v3244_v56  ;;  %v1531_v49 = vadd.f32 %v1511_v58, %v1407_v10  ;;  %v1263_v61 = vmul.f32 %v1237_v62, %v3224_v0  ;;  %v1264_v32 = vmul.f32 %v1241_v8, %v3224_v0 }
  0xee   :  { %v1635_v51 = vmul.f32 %v1597_v7, %v3259_v24  ;;  %v1361_v17 = vrot.slane %v3207_v42, %v2452_v19  ;;  %v1481_v28 = vrot.slane %v3164_v38, %v2454_v20  ;;  %v1373_v55 = vrot.slane %v3213_v63, %v2452_v19 }
  0xef   :  { %v1532_v30 = vadd.f32 %v1512_v40, %v1408_v27  ;;  %v1636_v23 = vmul.f32 %v1601_v11, %v3259_v24  ;;  %v1365_v29 = vrot.slane %v3199_v2, %v2452_v19  ;;  %v1369_v0 = vrot.slane %v3217_v52, %v2452_v19 }
  0xf0   :  { %v1285_v44 = vadd.f32 %v3229_v43, %v1261_v4  ;;  %v1286_v10 = vadd.f32 %v3229_v43, %v1262_v13  ;;  %v1389_v39 = vmul.f32 %v1357_v6, %v3238_v53  ;;  %v1289_v62 = vadd.f32 %v3229_v43, %v1265_v14 }
  0xf1   :  { %v3514_v8 = vadd.f32 %v1635_v51, %v1531_v49  ;;  %v1485_v7 = vrot.slane %v3207_v42, %v2454_v20  ;;  %v1287_v27 = vadd.f32 %v3229_v43, %v1263_v61  ;;  %v1288_v58 = vadd.f32 %v3229_v43, %v1264_v32 }
  0xf2   :  { %v1390_v11 = vmul.f32 %v1361_v17, %v3238_v53  ;;  %v1513_v40 = vmul.f32 %v1481_v28, %v3244_v56  ;;  %v1393_v4 = vmul.f32 %v1373_v55, %v3238_v53  ;;  %v1497_v13 = vrot.slane %v3213_v63, %v2454_v20 }
  0xf3   :  { %v1391_v14 = vmul.f32 %v1365_v29, %v3238_v53  ;;  %v1392_v49 = vmul.f32 %v1369_v0, %v3238_v53  ;;  %v1489_v61 = vrot.slane %v3199_v2, %v2454_v20  ;;  %v1493_v43 = vrot.slane %v3217_v52, %v2454_v20 }
  0xf4   :  { %v1409_v51 = vadd.f32 %v1389_v39, %v1285_v44  ;;  %v1410_v17 = vadd.f32 %v1390_v11, %v1286_v10  ;;  %v1413_v28 = vadd.f32 %v1393_v4, %v1289_v62  ;;  %v1514_v55 = vmul.f32 %v1485_v7, %v3244_v56 }
  0xf5   :  { %v1605_v53 = vrot.slane %v3164_v38, %v2456_v21  ;;  %v1411_v29 = vadd.f32 %v1391_v14, %v1287_v27  ;;  %v1412_v0 = vadd.f32 %v1392_v49, %v1288_v58  ;;  %v1609_v50 = vrot.slane %v3207_v42, %v2456_v21 }
  0xf6   :  { %v1517_v48 = vmul.f32 %v1497_v13, %v3244_v56  ;;  %v1621_v12 = vrot.slane %v3213_v63, %v2456_v21  ;;  %v1613_v44 = vrot.slane %v3199_v2, %v2456_v21  ;;  %v1515_v38 = vmul.f32 %v1489_v61, %v3244_v56 }
  0xf7   :  { %v1516_v39 = vmul.f32 %v1493_v43, %v3244_v56  ;;  %v1617_v62 = vrot.slane %v3217_v52, %v2456_v21  ;;  %v1533_v63 = vadd.f32 %v1513_v40, %v1409_v51  ;;  %v1534_v7 = vadd.f32 %v1514_v55, %v1410_v17 }
  0xf8   :  { %v1537_v27 = vadd.f32 %v1517_v48, %v1413_v28  ;;  %v3569_v56 = vadd.f32 %v1636_v23, %v1532_v30  ;;  %v1535_v11 = vadd.f32 %v1515_v38, %v1411_v29  ;;  %v1638_v40 = vmul.f32 %v1609_v50, %v3259_v24 }
  0xf9   :  { %v1536_v52 = vadd.f32 %v1516_v39, %v1412_v0  ;;  %v1641_v48 = vmul.f32 %v1621_v12, %v3259_v24  ;;  %v1639_v14 = vmul.f32 %v1613_v44, %v3259_v24  ;;  %v1640_v30 = vmul.f32 %v1617_v62, %v3259_v24 }
  0xfa   :  { %v3587_v43 = vadd.f32 %v1638_v40, %v1534_v7 }
  0xfb   :  { %v3589_v50 = vadd.f32 %v1641_v48, %v1537_v27  ;;  %v3600_v17 = vadd.f32 %v1640_v30, %v1536_v52 }
 0x107   :  { %v3398_v35 = vpop.permute.xlu1 %1099  ;;  %v3400_v59 = vpop.permute.xlu0 %1097 }
 0x108   :  { %v3537_v32 = vsel %vm1139_vm0, %v3400_v59, %v3398_v35 }
 0x109   :  { %v1669_v10 = vrot.slane %v3537_v32, %v2444_v15  ;;  %v1793_v4 = vrot.slane %v3537_v32, %v2452_v19 }
 0x10b   :  { %v3422_v36 = vpop.permute.xlu1 %1103  ;;  %v3424_v60 = vpop.permute.xlu0 %1101  ;;  %v1746_v13 = vmul.f32 %v1669_v10, %v3333_v25  ;;  %v1870_v28 = vmul.f32 %v1793_v4, %v3365_v22 }
 0x10c   :  { %v3561_v42 = vsel %vm1139_vm0, %v3398_v35, %v3424_v60  ;;  %v3567_v2 = vsel %vm1139_vm0, %v3424_v60, %v3422_v36  ;;  %v1637_v35 = vmul.f32 %v1605_v53, %v3259_v24  ;;  %v3598_v24 = vadd.f32 %v1639_v14, %v1535_v11 }
 0x10d   :  { %v1673_v60 = vrot.slane %v3561_v42, %v2444_v15  ;;  %v1677_v23 = vrot.slane %v3567_v2, %v2444_v15  ;;  %v1797_v12 = vrot.slane %v3561_v42, %v2452_v19  ;;  %v1766_v44 = vadd.f32 %v1746_v13, %v3283_v34 }
 0x10e   :  { %v3585_v61 = vadd.f32 %v1637_v35, %v1533_v63  ;;  %v1801_v38 = vrot.slane %v3567_v2, %v2452_v19 }
 0x10f   :  { %v3444_v47 = vpop.permute.xlu1 %1107  ;;  %v3446_v45 = vpop.permute.xlu0 %1105  ;;  %v1747_v10 = vmul.f32 %v1673_v60, %v3333_v25  ;;  %v1748_v62 = vmul.f32 %v1677_v23, %v3333_v25  ;;  %v3626_v27 = vmul.f32 %v1797_v12, %v3365_v22 }
 0x110   :  { %v3620_v63 = vsel %vm1139_vm0, %v3422_v36, %v3446_v45  ;;  %v3638_v36 = vsel %vm1139_vm0, %v3446_v45, %v3444_v47  ;;  %v3650_v60 = vmul.f32 %v1801_v38, %v3365_v22 }
 0x111   :  { %v1681_v14 = vrot.slane %v3620_v63, %v2444_v15  ;;  %v3659_v30 = vadd.f32 %v1747_v10, %v3318_v33  ;;  %v3662_v23 = vadd.f32 %v1748_v62, %v3327_v41  ;;  %v1685_v38 = vrot.slane %v3638_v36, %v2444_v15 }
 0x112   :  { %v1809_v33 = vrot.slane %v3638_v36, %v2452_v19 }
 0x113   :  { %v3682_v10 = vmul.f32 %v1681_v14, %v3333_v25 }
 0x114   :  { %v3469_v3 = vpop.permute.xlu1 %1111 }
 0x115   :  { %v3479_v31 = vpop.permute.xlu0 %1109 }
 0x118   :  { %v3494_v16 = vpop.permute.xlu1 %1115 }
 0x11b   :  { %v3508_v5 = vpop.permute.xlu0 %1113 }
 0x11e   :  { %v3525_v6 = vpop.permute.xlu1 %1119 }
 0x121   :  { %v3542_v9 = vpop.permute.xlu0 %1117 }
 0x124   :  { %v1124_v58 = vpop.permute.xlu1 %1123 }
 0x128   :  { %v3583_v49 = vpop.permute.xlu0 %1121 }
 0x129   :  { %v3596_v51 = vsel %vm1139_vm0, %v3583_v49, %v1124_v58 }
 0x12a   :  { %v1717_v29 = vrot.slane %v3596_v51, %v2444_v15  ;;  %v1128_v0 = vpop.permute.xlu1 %1127  ;;  %v1841_v34 = vrot.slane %v3596_v51, %v2452_v19 }
 0x12c   :  { %v1758_v7 = vmul.f32 %v1717_v29, %v3333_v25  ;;  %v3665_v29 = vadd.f32 %v1870_v28, %v1766_v44 }
 0x12d   :  { %v1126_v35 = vpop.permute.xlu0 %1125 }
 0x12e   :  { %v1778_v40 = vadd.f32 %v1758_v7, %v3481_v18  ;;  %v3643_v48 = vsel %vm1139_vm0, %v1126_v35, %v1128_v0  ;;  %v3647_v13 = vsel %vm1139_vm0, %v1124_v58, %v1126_v35  ;;  %v1882_v58 = vmul.f32 %v1841_v34, %v3365_v22 }
 0x12f   :  { %v1721_v45 = vrot.slane %v3647_v13, %v2444_v15  ;;  %v1725_v18 = vrot.slane %v3643_v48, %v2444_v15  ;;  %v1805_v7 = vrot.slane %v3620_v63, %v2452_v19  ;;  %v1845_v41 = vrot.slane %v3647_v13, %v2452_v19 }
 0x130   :  { %v1132_v12 = vpop.permute.xlu1 %1131  ;;  %v1849_v28 = vrot.slane %v3643_v48, %v2452_v19  ;;  %v3679_v44 = vadd.f32 %v1882_v58, %v1778_v40  ;;  %v1750_v34 = vmul.f32 %v1685_v38, %v3333_v25 }
 0x131   :  { %v1759_v35 = vmul.f32 %v1721_v45, %v3333_v25  ;;  %v1760_v4 = vmul.f32 %v1725_v18, %v3333_v25  ;;  %v3692_v45 = vsel %vm1139_vm0, %v3444_v47, %v3479_v31  ;;  %v1130_v18 = vpop.permute.xlu0 %1129  ;;  %v1883_v38 = vmul.f32 %v1845_v41, %v3365_v22 }
 0x132   :  { %4507 = vst [vmem:[#allocation7_spill] sm:$0xff] %v3679_v44  ;;  %v3698_v14 = vsel %vm1139_vm0, %v1130_v18, %v1132_v12  ;;  %v3702_v58 = vsel %vm1139_vm0, %v1128_v0, %v1130_v18  ;;  %v3717_v0 = vsel %vm1139_vm0, %v3479_v31, %v3469_v3  ;;  %v3722_v18 = vmul.f32 %v1805_v7, %v3365_v22 }
 0x133   :  { %v1779_v53 = vadd.f32 %v1759_v35, %v3514_v8  ;;  %v1780_v40 = vadd.f32 %v1760_v4, %v3569_v56  ;;  %4508 = vst [vmem:[#allocation8_spill] sm:$0xff] %v3698_v14  ;;  %v1729_v47 = vrot.slane %v3702_v58, %v2444_v15  ;;  %v1733_v8 = vrot.slane %v3698_v14, %v2444_v15 }
 0x134   :  { %v1136_v56 = vpop.permute.xlu1 %1135  ;;  %v1884_v35 = vmul.f32 %v1849_v28, %v3365_v22  ;;  %v1689_v52 = vrot.slane %v3692_v45, %v2444_v15  ;;  %v1853_v62 = vrot.slane %v3702_v58, %v2452_v19  ;;  %v1693_v55 = vrot.slane %v3717_v0, %v2444_v15 }
 0x135   :  { %v1761_v11 = vmul.f32 %v1729_v47, %v3333_v25  ;;  %v1762_v4 = vmul.f32 %v1733_v8, %v3333_v25  ;;  %v3733_v31 = vsel %vm1139_vm0, %v1136_v56, %v3400_v59  ;;  %v3735_v28 = vadd.f32 %v1883_v38, %v1779_v53 }
 0x136   :  { %v3737_v7 = vadd.f32 %v1884_v35, %v1780_v40  ;;  %v1857_v47 = vrot.slane %v3698_v14, %v2452_v19  ;;  %v1745_v8 = vrot.slane %v3733_v31, %v2444_v15  ;;  %v1869_v39 = vrot.slane %v3733_v31, %v2452_v19 }
 0x137   :  { %v1134_v41 = vpop.permute.xlu0 %1133  ;;  %4509 = vst [vmem:[#allocation9_spill] sm:$0xff] %v3735_v28  ;;  %v1781_v59 = vadd.f32 %v1761_v11, %v3585_v61  ;;  %v1782_v44 = vadd.f32 %v1762_v4, %v3587_v43  ;;  %v3767_v43 = vsel %vm1139_vm0, %v3508_v5, %v3494_v16  ;;  %v1885_v11 = vmul.f32 %v1853_v62, %v3365_v22 }
 0x138   :  { %4510 = vst [vmem:[#allocation10_spill] sm:$0xff] %v3737_v7  ;;  %v3751_v53 = vsel %vm1139_vm0, %v1134_v41, %v1136_v56  ;;  %v3755_v40 = vsel %vm1139_vm0, %v1132_v12, %v1134_v41  ;;  %v1765_v38 = vmul.f32 %v1745_v8, %v3333_v25  ;;  %v1889_v35 = vmul.f32 %v1869_v39, %v3365_v22 }
 0x139   :  { %4511 = vst [vmem:[#allocation11_spill] sm:$0xff] %v3751_v53  ;;  %4512 = vst [vmem:[#allocation12_spill] sm:$0xff] %v3755_v40  ;;  %v1737_v7 = vrot.slane %v3755_v40, %v2444_v15  ;;  %v1741_v61 = vrot.slane %v3751_v53, %v2444_v15  ;;  %v1861_v12 = vrot.slane %v3755_v40, %v2452_v19 }
 0x13a   :  { %v1865_v39 = vrot.slane %v3751_v53, %v2452_v19  ;;  %v1886_v56 = vmul.f32 %v1857_v47, %v3365_v22  ;;  %v1785_v4 = vadd.f32 %v1765_v38, %v3589_v50  ;;  %v3782_v14 = vsel %vm1139_vm0, %v3469_v3, %v3508_v5 }
 0x13b   :  { %v1763_v41 = vmul.f32 %v1737_v7, %v3333_v25  ;;  %v1764_v8 = vmul.f32 %v1741_v61, %v3333_v25  ;;  %v1887_v62 = vmul.f32 %v1861_v12, %v3365_v22  ;;  %v3786_v28 = vadd.f32 %v1885_v11, %v1781_v59 }
 0x13c   :  { %v1888_v40 = vmul.f32 %v1865_v39, %v3365_v22  ;;  %v3790_v38 = vadd.f32 %v1886_v56, %v1782_v44  ;;  %v3792_v7 = vadd.f32 %v1889_v35, %v1785_v4  ;;  %v1874_v61 = vmul.f32 %v1809_v33, %v3365_v22 }
 0x13d   :  { %v1783_v47 = vadd.f32 %v1763_v41, %v3598_v24  ;;  %v1784_v50 = vadd.f32 %v1764_v8, %v3600_v17  ;;  %v1751_v53 = vmul.f32 %v1689_v52, %v3333_v25  ;;  %v1752_v3 = vmul.f32 %v1693_v55, %v3333_v25 }
 0x13e   :  { %v1813_v5 = vrot.slane %v3692_v45, %v2452_v19  ;;  %v1697_v59 = vrot.slane %v3782_v14, %v2444_v15  ;;  %v1701_v24 = vrot.slane %v3767_v43, %v2444_v15  ;;  %v1769_v33 = vadd.f32 %v3682_v10, %v3339_v54 }
 0x13f   :  { %v3803_v17 = vadd.f32 %v1887_v62, %v1783_v47  ;;  %v3805_v44 = vadd.f32 %v1888_v40, %v1784_v50  ;;  %v1770_v52 = vadd.f32 %v1750_v34, %v3355_v1  ;;  %v1817_v55 = vrot.slane %v3717_v0, %v2452_v19 }
 0x140   :  { %v1891_v35 = vadd.f32 %v3626_v27, %v3659_v30  ;;  %v1937_v11 = vrot.slane %v3692_v45, %v2454_v20  ;;  %v1941_v12 = vrot.slane %v3717_v0, %v2454_v20  ;;  %v1892_v54 = vadd.f32 %v3650_v60, %v3662_v23 }
 0x141   :  { %v1771_v1 = vadd.f32 %v1751_v53, %v3373_v37  ;;  %v1821_v27 = vrot.slane %v3782_v14, %v2452_v19  ;;  %v1825_v30 = vrot.slane %v3767_v43, %v2452_v19  ;;  %v1772_v34 = vadd.f32 %v1752_v3, %v3377_v46  ;;  %v4513_v3 = vld [vmem:[#allocation4_spill] sm:$0xff] }
 0x142   :  { %v1875_v39 = vmul.f32 %v1813_v5, %v3365_v22  ;;  %v1753_v56 = vmul.f32 %v1697_v59, %v3333_v25  ;;  %v1754_v4 = vmul.f32 %v1701_v24, %v3333_v25  ;;  %v1876_v60 = vmul.f32 %v1817_v55, %v3365_v22 }
 0x143   :  { %v3838_v37 = vsel %vm1139_vm0, %v3494_v16, %v3542_v9  ;;  %v1893_v23 = vadd.f32 %v3722_v18, %v1769_v33  ;;  %v1894_v53 = vadd.f32 %v1874_v61, %v1770_v52  ;;  %v1945_v46 = vrot.slane %v3782_v14, %v2454_v20 }
 0x144   :  { %v1877_v47 = vmul.f32 %v1821_v27, %v3365_v22  ;;  %v1878_v16 = vmul.f32 %v1825_v30, %v3365_v22  ;;  %v3855_v18 = vsel %vm1139_vm0, %v3542_v9, %v3525_v6  ;;  %v1895_v50 = vadd.f32 %v1875_v39, %v1771_v1 }
 0x145   :  { %v1773_v61 = vadd.f32 %v1753_v56, %v3407_v57  ;;  %v1774_v5 = vadd.f32 %v1754_v4, %v4513_v3  ;;  %v1705_v59 = vrot.slane %v3838_v37, %v2444_v15  ;;  %v3861_v24 = vpop.permute.xlu1 %2035  ;;  %v1896_v52 = vadd.f32 %v1876_v60, %v1772_v34 }
 0x146   :  { %v4514_v55 = vrot.slane %v3561_v42, %v2454_v20  ;;  %v4515_v9 = vrot.slane %v3537_v32, %v2454_v20  ;;  %v4516_v1 = vrot.slane %v3620_v63, %v2454_v20  ;;  %v4517_v39 = vrot.slane %v3567_v2, %v2454_v20 }
 0x147   :  { %v1709_v56 = vrot.slane %v3855_v18, %v2444_v15  ;;  %v1829_v4 = vrot.slane %v3838_v37, %v2452_v19  ;;  %v1833_v60 = vrot.slane %v3855_v18, %v2452_v19  ;;  %v1953_v3 = vrot.slane %v3838_v37, %v2454_v20 }
 0x148   :  { %v3863_v33 = vpop.permute.xlu0 %1911  ;;  %v4519_v62 = vrot.slane %v3537_v32, %v2456_v21  ;;  %v1957_v8 = vrot.slane %v3855_v18, %v2454_v20  ;;  %v1755_v41 = vmul.f32 %v1705_v59, %v3333_v25 }
 0x149   :  { %v1995_v27 = vmul.f32 %v4514_v55, %v3863_v33  ;;  %v1994_v57 = vmul.f32 %v4515_v9, %v3863_v33  ;;  %v1997_v30 = vmul.f32 %v4516_v1, %v3863_v33  ;;  %v1996_v34 = vmul.f32 %v4517_v39, %v3863_v33 }
 0x14a   :  { %v4518_v9 = vrot.slane %v3561_v42, %v2456_v21  ;;  %v2118_v10 = vmul.f32 %v4519_v62, %v3861_v24  ;;  %v4520_v42 = vrot.slane %v3638_v36, %v2454_v20  ;;  %v1756_v40 = vmul.f32 %v1709_v56, %v3333_v25 }
 0x14b   :  { %v2015_v55 = vadd.f32 %v1995_v27, %v1891_v35  ;;  %v2014_v39 = vadd.f32 %v1994_v57, %v3665_v29  ;;  %v3904_v35 = vsel %vm1139_vm0, %v3525_v6, %v3583_v49  ;;  %v1999_v27 = vmul.f32 %v1937_v11, %v3863_v33 }
 0x14c   :  { %v2119_v1 = vmul.f32 %v4518_v9, %v3861_v24  ;;  %v1998_v29 = vmul.f32 %v4520_v42, %v3863_v33  ;;  %v2017_v62 = vadd.f32 %v1997_v30, %v1893_v23  ;;  %v2016_v9 = vadd.f32 %v1996_v34, %v1892_v54  ;;  %v4524_v42 = vld [vmem:[#allocation6_spill] sm:$0xff] }
 0x14d   :  { %v3913_v32 = vadd.f32 %v2118_v10, %v2014_v39  ;;  %v1879_v6 = vmul.f32 %v1829_v4, %v3365_v22  ;;  %v2077_v49 = vrot.slane %v3838_v37, %v2456_v21  ;;  %v1713_v11 = vrot.slane %v3904_v35, %v2444_v15 }
 0x14e   :  { %v3911_v57 = vadd.f32 %v2119_v1, %v2015_v55  ;;  %v4521_v54 = vrot.slane %v3620_v63, %v2456_v21  ;;  %v4522_v23 = vrot.slane %v3567_v2, %v2456_v21  ;;  %v1880_v37 = vmul.f32 %v1833_v60, %v3365_v22  ;;  %v4523_v63 = vld [vmem:[#allocation5_spill] sm:$0xff] }
 0x14f   :  { %2158 = vrot.lane.b32.xlu1 %v3913_v32, %s2395_s1  ;;  %v1897_v30 = vadd.f32 %v1877_v47, %v1773_v61  ;;  %v2001_v15 = vmul.f32 %v1945_v46, %v3863_v33  ;;  %v2000_v34 = vmul.f32 %v1941_v12, %v3863_v33  ;;  %v2019_v55 = vadd.f32 %v1999_v27, %v1895_v50 }
 0x150   :  { %2160 = vrot.lane.b32.xlu0 %v3911_v57, %s2395_s1  ;;  %v2121_v10 = vmul.f32 %v4521_v54, %v3861_v24  ;;  %v2120_v59 = vmul.f32 %v4522_v23, %v3861_v24  ;;  %v2018_v1 = vadd.f32 %v1998_v29, %v1894_v53  ;;  %v1775_v39 = vadd.f32 %v1755_v41, %v4523_v63 }
 0x151   :  { %v1776_v54 = vadd.f32 %v1756_v40, %v4524_v42  ;;  %v1837_v2 = vrot.slane %v3904_v35, %v2452_v19  ;;  %v1898_v23 = vadd.f32 %v1878_v16, %v1774_v5  ;;  %v1757_v47 = vmul.f32 %v1713_v11, %v3333_v25 }
 0x152   :  { %v3937_v56 = vadd.f32 %v2121_v10, %v2017_v62  ;;  %v3939_v4 = vadd.f32 %v2120_v59, %v2016_v9  ;;  %v4525_v12 = vrot.slane %v3692_v45, %v2456_v21  ;;  %v4526_v40 = vrot.slane %v3638_v36, %v2456_v21  ;;  %v4530_v9 = vld [vmem:[#allocation3_spill] sm:$0xff] }
 0x153   :  { %v1961_v19 = vrot.slane %v3904_v35, %v2454_v20  ;;  %v1993_v25 = vrot.slane %v3733_v31, %v2454_v20  ;;  %v2021_v41 = vadd.f32 %v2001_v15, %v1897_v30  ;;  %v2020_v16 = vadd.f32 %v2000_v34, %v1896_v52 }
 0x154   :  { %2164 = vrot.lane.b32.xlu0 %v3937_v56, %s2395_s1  ;;  %2162 = vrot.lane.b32.xlu1 %v3939_v4, %s2395_s1  ;;  %v2123_v53 = vmul.f32 %v4525_v12, %v3861_v24  ;;  %v2122_v46 = vmul.f32 %v4526_v40, %v3861_v24  ;;  %v2003_v45 = vmul.f32 %v1953_v3, %v3863_v33 }
 0x155   :  { %v4527_v5 = vrot.slane %v3767_v43, %v2454_v20  ;;  %v2117_v60 = vrot.slane %v3733_v31, %v2456_v21  ;;  %v4528_v27 = vrot.slane %v3782_v14, %v2456_v21  ;;  %v4529_v52 = vrot.slane %v3717_v0, %v2456_v21 }
 0x156   :  { %v3962_v50 = vadd.f32 %v2123_v53, %v2019_v55  ;;  %v3964_v61 = vadd.f32 %v2122_v46, %v2018_v1  ;;  %v2013_v3 = vmul.f32 %v1993_v25, %v3863_v33  ;;  %v1777_v11 = vadd.f32 %v1757_v47, %v4530_v9 }
 0x157   :  { %v2002_v36 = vmul.f32 %v4527_v5, %v3863_v33  ;;  %v2125_v29 = vmul.f32 %v4528_v27, %v3861_v24  ;;  %v2124_v62 = vmul.f32 %v4529_v52, %v3861_v24  ;;  %v1881_v10 = vmul.f32 %v1837_v2, %v3365_v22 }
 0x158   :  { %2168 = vrot.lane.b32.xlu0 %v3962_v50, %s2395_s1  ;;  %2166 = vrot.lane.b32.xlu1 %v3964_v61, %s2395_s1  ;;  %v1899_v31 = vadd.f32 %v1879_v6, %v1775_v39  ;;  %v2033_v0 = vadd.f32 %v2013_v3, %v3792_v7  ;;  %v2137_v30 = vmul.f32 %v2117_v60, %v3861_v24  ;;  %v4533_v60 = vld [vmem:[#allocation7_spill] sm:$0xff]  ;;  %v4535_v3 = vld [vmem:[#allocation12_spill] sm:$0xff] }
 0x159   :  { %v3988_v14 = vadd.f32 %v2125_v29, %v2021_v41  ;;  %v3990_v59 = vadd.f32 %v2124_v62, %v2020_v16  ;;  %v2022_v34 = vadd.f32 %v2002_v36, %v1898_v23  ;;  %v2005_v55 = vmul.f32 %v1961_v19, %v3863_v33  ;;  %v4532_v41 = vld [vmem:[#allocation9_spill] sm:$0xff]  ;;  %v4534_v62 = vld [vmem:[#allocation8_spill] sm:$0xff] }
 0x15a   :  { %v2023_v15 = vadd.f32 %v2003_v45, %v1899_v31  ;;  %v2004_v22 = vmul.f32 %v1957_v8, %v3863_v33  ;;  %v1965_v1 = vrot.slane %v3596_v51, %v2454_v20  ;;  %v1969_v6 = vrot.slane %v3647_v13, %v2454_v20 }
 0x15b   :  { %v1900_v63 = vadd.f32 %v1880_v37, %v1776_v54  ;;  %v4000_v39 = vadd.f32 %v2137_v30, %v2033_v0  ;;  %v2127_v7 = vmul.f32 %v2077_v49, %v3861_v24  ;;  %v4531_v8 = vrot.slane %v3767_v43, %v2456_v21 }
 0x15c   :  { %2172 = vrot.lane.b32.xlu0 %v3988_v14, %s2395_s1  ;;  %2170 = vrot.lane.b32.xlu1 %v3990_v59, %s2395_s1  ;;  %v1901_v2 = vadd.f32 %v1881_v10, %v1777_v11  ;;  %v2081_v23 = vrot.slane %v3855_v18, %v2456_v21  ;;  %v2085_v37 = vrot.slane %v3904_v35, %v2456_v21 }
 0x15d   :  { %v2126_v42 = vmul.f32 %v4531_v8, %v3861_v24  ;;  %v2007_v54 = vmul.f32 %v1969_v6, %v3863_v33  ;;  %v2006_v47 = vmul.f32 %v1965_v1, %v3863_v33  ;;  %v4017_v12 = vadd.f32 %v2127_v7, %v2023_v15  ;;  %v4536_v15 = vld [vmem:[#allocation10_spill] sm:$0xff]  ;;  %v4537_v6 = vld [vmem:[#allocation11_spill] sm:$0xff] }
 0x15e   :  { %v2025_v49 = vadd.f32 %v2005_v55, %v1901_v2  ;;  %v2024_v40 = vadd.f32 %v2004_v22, %v1900_v63  ;;  %v1977_v43 = vrot.slane %v3702_v58, %v2454_v20  ;;  %v1973_v46 = vrot.slane %v3643_v48, %v2454_v20 }
 0x15f   :  { %v4019_v53 = vadd.f32 %v2126_v42, %v2022_v34  ;;  %v2129_v18 = vmul.f32 %v2085_v37, %v3861_v24  ;;  %v2128_v35 = vmul.f32 %v2081_v23, %v3861_v24  ;;  %v2089_v19 = vrot.slane %v3596_v51, %v2456_v21 }
 0x160   :  { %2176 = vrot.lane.b32.xlu0 %v4017_v12, %s2395_s1  ;;  %v2093_v25 = vrot.slane %v3647_v13, %v2456_v21  ;;  %v2027_v16 = vadd.f32 %v2007_v54, %v4532_v41  ;;  %v2009_v45 = vmul.f32 %v1977_v43, %v3863_v33  ;;  %v2026_v27 = vadd.f32 %v2006_v47, %v4533_v60 }
 0x161   :  { %2174 = vrot.lane.b32.xlu1 %v4019_v53, %s2395_s1  ;;  %v4037_v5 = vadd.f32 %v2129_v18, %v2025_v49  ;;  %v4039_v36 = vadd.f32 %v2128_v35, %v2024_v40  ;;  %v2008_v29 = vmul.f32 %v1973_v46, %v3863_v33  ;;  %v1981_v51 = vrot.slane %v4534_v62, %v2454_v20 }
 0x162   :  { %v2131_v52 = vmul.f32 %v2093_v25, %v3861_v24  ;;  %v1985_v13 = vrot.slane %v4535_v3, %v2454_v20  ;;  %v2130_v9 = vmul.f32 %v2089_v19, %v3861_v24  ;;  %v2097_v11 = vrot.slane %v3643_v48, %v2456_v21 }
 0x163   :  { %v2101_v10 = vrot.slane %v3702_v58, %v2456_v21  ;;  %v2029_v0 = vadd.f32 %v2009_v45, %v3786_v28  ;;  %v2028_v34 = vadd.f32 %v2008_v29, %v4536_v15  ;;  %v2010_v22 = vmul.f32 %v1981_v51, %v3863_v33 }
 0x164   :  { %2180 = vrot.lane.b32.xlu0 %v4037_v5, %s2395_s1  ;;  %v4057_v31 = vadd.f32 %v2131_v52, %v2027_v16  ;;  %v4060_v30 = vadd.f32 %v2130_v9, %v2026_v27  ;;  %v2011_v55 = vmul.f32 %v1985_v13, %v3863_v33  ;;  %v1989_v48 = vrot.slane %v4537_v6, %v2454_v20 }
 0x165   :  { %2178 = vrot.lane.b32.xlu1 %v4039_v36, %s2395_s1  ;;  %v2133_v1 = vmul.f32 %v2101_v10, %v3861_v24  ;;  %v2132_v58 = vmul.f32 %v2097_v11, %v3861_v24  ;;  %v2105_v28 = vrot.slane %v4534_v62, %v2456_v21  ;;  %v2109_v63 = vrot.slane %v4535_v3, %v2456_v21 }
 0x166   :  { %v2031_v20 = vadd.f32 %v2011_v55, %v3803_v17  ;;  %v2030_v42 = vadd.f32 %v2010_v22, %v3790_v38  ;;  %v2012_v2 = vmul.f32 %v1989_v48, %v3863_v33  ;;  %v2113_v54 = vrot.slane %v4537_v6, %v2456_v21 }
 0x167   :  { %v4077_v7 = vadd.f32 %v2133_v1, %v2029_v0  ;;  %v4079_v8 = vadd.f32 %v2132_v58, %v2028_v34  ;;  %v2135_v23 = vmul.f32 %v2109_v63, %v3861_v24  ;;  %v2134_v37 = vmul.f32 %v2105_v28, %v3861_v24 }
 0x168   :  { %2184 = vrot.lane.b32.xlu0 %v4057_v31, %s2395_s1  ;;  %v2032_v38 = vadd.f32 %v2012_v2, %v3805_v44  ;;  %v2136_v33 = vmul.f32 %v2113_v54, %v3861_v24 }
 0x169   :  { %2182 = vrot.lane.b32.xlu1 %v4060_v30, %s2395_s1  ;;  %v4092_v47 = vadd.f32 %v2135_v23, %v2031_v20  ;;  %v4094_v17 = vadd.f32 %v2134_v37, %v2030_v42 }
 0x16a   :  { %v4102_v49 = vadd.f32 %v2136_v33, %v2032_v38 }
 0x16c   :  { %2188 = vrot.lane.b32.xlu0 %v4077_v7, %s2395_s1 }
 0x16d   :  { %2186 = vrot.lane.b32.xlu1 %v4079_v8, %s2395_s1 }
 0x170   :  { %2192 = vrot.lane.b32.xlu0 %v4092_v47, %s2395_s1 }
 0x171   :  { %2190 = vrot.lane.b32.xlu1 %v4094_v17, %s2395_s1 }
 0x174   :  { %2196 = vrot.lane.b32.xlu0 %v4000_v39, %s2395_s1 }
 0x175   :  { %2194 = vrot.lane.b32.xlu1 %v4102_v49, %s2395_s1 }
 0x1c1   :  { %v4108_v40 = vpop.permute.xlu1 %2158 }
 0x1c2   :  { %v2161_v21 = vpop.permute.xlu0 %2160 }
 0x1c3   :  { %v2216_v44 = vsel %vm1139_vm0, %v4108_v40, %v2161_v21 }
 0x1c4   :  { %v4114_v43 = vmax.f32 %v3913_v32, %v2216_v44 }
 0x1c6   :  { %v2165_v46 = vpop.permute.xlu0 %2164  ;;  %2238 = vrot.lane.b32.xlu1 %v4114_v43, %s2396_s16  ;;  %v2163_v24 = vpop.permute.xlu1 %2162 }
 0x1c7   :  { %v2214_v18 = vsel %vm1139_vm0, %v2163_v24, %v2165_v46  ;;  %v2215_v35 = vsel %vm1139_vm0, %v2161_v21, %v2163_v24 }
 0x1c8   :  { %v4123_v19 = vmax.f32 %v3911_v57, %v2215_v35  ;;  %v4126_v25 = vmax.f32 %v3939_v4, %v2214_v18 }
 0x1ca   :  { %v2169_v32 = vpop.permute.xlu0 %2168  ;;  %2240 = vrot.lane.b32.xlu0 %v4123_v19, %s2396_s16  ;;  %2242 = vrot.lane.b32.xlu1 %v4126_v25, %s2396_s16  ;;  %v2167_v41 = vpop.permute.xlu1 %2166 }
 0x1cb   :  { %v2212_v16 = vsel %vm1139_vm0, %v2167_v41, %v2169_v32  ;;  %v2213_v45 = vsel %vm1139_vm0, %v2165_v46, %v2167_v41 }
 0x1cc   :  { %v4137_v57 = vmax.f32 %v3937_v56, %v2213_v45  ;;  %v4140_v4 = vmax.f32 %v3964_v61, %v2212_v16 }
 0x1ce   :  { %v2173_v60 = vpop.permute.xlu0 %2172  ;;  %2244 = vrot.lane.b32.xlu0 %v4137_v57, %s2396_s16  ;;  %2246 = vrot.lane.b32.xlu1 %v4140_v4, %s2396_s16  ;;  %v2171_v27 = vpop.permute.xlu1 %2170 }
 0x1cf   :  { %v2210_v29 = vsel %vm1139_vm0, %v2171_v27, %v2173_v60  ;;  %v2211_v52 = vsel %vm1139_vm0, %v2169_v32, %v2171_v27 }
 0x1d0   :  { %v4151_v56 = vmax.f32 %v3962_v50, %v2211_v52  ;;  %v4154_v61 = vmax.f32 %v3990_v59, %v2210_v29 }
 0x1d2   :  { %v2177_v62 = vpop.permute.xlu0 %2176  ;;  %2248 = vrot.lane.b32.xlu0 %v4151_v56, %s2396_s16  ;;  %2250 = vrot.lane.b32.xlu1 %v4154_v61, %s2396_s16 }
 0x1d3   :  { %v2175_v51 = vpop.permute.xlu1 %2174 }
 0x1d4   :  { %v2208_v3 = vsel %vm1139_vm0, %v2175_v51, %v2177_v62  ;;  %v2209_v13 = vsel %vm1139_vm0, %v2173_v60, %v2175_v51 }
 0x1d5   :  { %v4165_v50 = vmax.f32 %v3988_v14, %v2209_v13  ;;  %v4168_v59 = vmax.f32 %v4019_v53, %v2208_v3 }
 0x1d6   :  { %v2181_v9 = vpop.permute.xlu0 %2180 }
 0x1d7   :  { %2252 = vrot.lane.b32.xlu0 %v4165_v50, %s2396_s16  ;;  %2254 = vrot.lane.b32.xlu1 %v4168_v59, %s2396_s16  ;;  %v2179_v11 = vpop.permute.xlu1 %2178 }
 0x1d8   :  { %v2206_v10 = vsel %vm1139_vm0, %v2179_v11, %v2181_v9  ;;  %v2207_v0 = vsel %vm1139_vm0, %v2177_v62, %v2179_v11 }
 0x1d9   :  { %v4179_v14 = vmax.f32 %v4017_v12, %v2207_v0  ;;  %v4182_v53 = vmax.f32 %v4039_v36, %v2206_v10 }
 0x1da   :  { %v2185_v15 = vpop.permute.xlu0 %2184 }
 0x1db   :  { %2256 = vrot.lane.b32.xlu0 %v4179_v14, %s2396_s16  ;;  %2258 = vrot.lane.b32.xlu1 %v4182_v53, %s2396_s16  ;;  %v2183_v34 = vpop.permute.xlu1 %2182 }
 0x1dc   :  { %v2204_v55 = vsel %vm1139_vm0, %v2183_v34, %v2185_v15  ;;  %v2205_v22 = vsel %vm1139_vm0, %v2181_v9, %v2183_v34 }
 0x1dd   :  { %v4193_v12 = vmax.f32 %v4037_v5, %v2205_v22  ;;  %v4196_v36 = vmax.f32 %v4060_v30, %v2204_v55 }
 0x1de   :  { %v2189_v1 = vpop.permute.xlu0 %2188 }
 0x1df   :  { %2260 = vrot.lane.b32.xlu0 %v4193_v12, %s2396_s16  ;;  %2262 = vrot.lane.b32.xlu1 %v4196_v36, %s2396_s16  ;;  %v2187_v6 = vpop.permute.xlu1 %2186 }
 0x1e0   :  { %v2202_v48 = vsel %vm1139_vm0, %v2187_v6, %v2189_v1  ;;  %v2203_v58 = vsel %vm1139_vm0, %v2185_v15, %v2187_v6 }
 0x1e1   :  { %v4207_v5 = vmax.f32 %v4057_v31, %v2203_v58  ;;  %v4210_v30 = vmax.f32 %v4079_v8, %v2202_v48 }
 0x1e2   :  { %v2193_v28 = vpop.permute.xlu0 %2192 }
 0x1e3   :  { %2264 = vrot.lane.b32.xlu0 %v4207_v5, %s2396_s16  ;;  %2266 = vrot.lane.b32.xlu1 %v4210_v30, %s2396_s16  ;;  %v2191_v63 = vpop.permute.xlu1 %2190 }
 0x1e4   :  { %v2200_v20 = vsel %vm1139_vm0, %v2191_v63, %v2193_v28  ;;  %v2201_v42 = vsel %vm1139_vm0, %v2189_v1, %v2191_v63 }
 0x1e5   :  { %v4221_v31 = vmax.f32 %v4077_v7, %v2201_v42  ;;  %v4224_v8 = vmax.f32 %v4094_v17, %v2200_v20 }
 0x1e6   :  { %v2197_v2 = vpop.permute.xlu0 %2196 }
 0x1e7   :  { %2268 = vrot.lane.b32.xlu0 %v4221_v31, %s2396_s16  ;;  %2270 = vrot.lane.b32.xlu1 %v4224_v8, %s2396_s16  ;;  %v2195_v23 = vpop.permute.xlu1 %2194  ;;  %v2217_v38 = vsel %vm1139_vm0, %v2197_v2, %v4108_v40 }
 0x1e8   :  { %v2198_v37 = vsel %vm1139_vm0, %v2195_v23, %v2197_v2  ;;  %v2199_v54 = vsel %vm1139_vm0, %v2193_v28, %v2195_v23  ;;  %v4248_v33 = vmax.f32 %v4000_v39, %v2217_v38 }
 0x1e9   :  { %v4235_v7 = vmax.f32 %v4092_v47, %v2199_v54  ;;  %v4238_v17 = vmax.f32 %v4102_v49, %v2198_v37 }
 0x1eb   :  { %2272 = vrot.lane.b32.xlu0 %v4235_v7, %s2396_s16  ;;  %2274 = vrot.lane.b32.xlu1 %v4238_v17, %s2396_s16 }
 0x1ef   :  { %2276 = vrot.lane.b32.xlu0 %v4248_v33, %s2396_s16 }
 0x238   :  { %v4252_v47 = vpop.permute.xlu1 %2238 }
 0x23c   :  { %v2241_v49 = vpop.permute.xlu0 %2240  ;;  %v2243_v21 = vpop.permute.xlu1 %2242 }
 0x23d   :  { %v2297_v40 = vsel %vm2278_vm1, %v4252_v47, %v2241_v49  ;;  %v2296_v44 = vsel %vm2278_vm1, %v2241_v49, %v2243_v21 }
 0x23e   :  { %v2299_v46 = vmax.f32 %v4114_v43, %v2297_v40  ;;  %v2300_v39 = vmax.f32 %v4123_v19, %v2296_v44 }
 0x240   :  { %v2319_v24 = vmax.f32 %v2299_v46, 0.0  ;;  %v2320_v18 = vmax.f32 %v2300_v39, 0.0  ;;  %v2245_v35 = vpop.permute.xlu0 %2244  ;;  %v2247_v32 = vpop.permute.xlu1 %2246 }
 0x241   :  { %v2295_v41 = vsel %vm2278_vm1, %v2243_v21, %v2245_v35  ;;  %v2294_v16 = vsel %vm2278_vm1, %v2245_v35, %v2247_v32 }
 0x242   :  { %2339 = vst [vmem:[%s4381_s4] sm:$0xff] %v2319_v24  ;;  %2340 = vst [vmem:[%s4381_s4 + $0x8] sm:$0xff] %v2320_v18  ;;  %v2301_v43 = vmax.f32 %v4126_v25, %v2295_v41  ;;  %v2302_v19 = vmax.f32 %v4137_v57, %v2294_v16 }
 0x244   :  { %v2321_v45 = vmax.f32 %v2301_v43, 0.0  ;;  %v2322_v60 = vmax.f32 %v2302_v19, 0.0  ;;  %v2249_v27 = vpop.permute.xlu0 %2248  ;;  %v2251_v29 = vpop.permute.xlu1 %2250 }
 0x245   :  { %v2293_v52 = vsel %vm2278_vm1, %v2247_v32, %v2249_v27  ;;  %v2292_v62 = vsel %vm2278_vm1, %v2249_v27, %v2251_v29 }
 0x246   :  { %2341 = vst [vmem:[%s4381_s4 + $0x10] sm:$0xff] %v2321_v45  ;;  %2342 = vst [vmem:[%s4381_s4 + $0x18] sm:$0xff] %v2322_v60  ;;  %v2303_v25 = vmax.f32 %v4140_v4, %v2293_v52  ;;  %v2304_v57 = vmax.f32 %v4151_v56, %v2292_v62 }
 0x248   :  { %v2323_v51 = vmax.f32 %v2303_v25, 0.0  ;;  %v2324_v3 = vmax.f32 %v2304_v57, 0.0 }
 0x249   :  { %v2253_v13 = vpop.permute.xlu0 %2252  ;;  %v2255_v9 = vpop.permute.xlu1 %2254 }
 0x24a   :  { %v2291_v11 = vsel %vm2278_vm1, %v2251_v29, %v2253_v13  ;;  %v2290_v10 = vsel %vm2278_vm1, %v2253_v13, %v2255_v9  ;;  %2343 = vst [vmem:[%s4381_s4 + $0x20] sm:$0xff] %v2323_v51  ;;  %2344 = vst [vmem:[%s4381_s4 + $0x28] sm:$0xff] %v2324_v3 }
 0x24b   :  { %v2305_v4 = vmax.f32 %v4154_v61, %v2291_v11  ;;  %v2306_v56 = vmax.f32 %v4165_v50, %v2290_v10 }
 0x24d   :  { %v2325_v0 = vmax.f32 %v2305_v4, 0.0  ;;  %v2326_v15 = vmax.f32 %v2306_v56, 0.0  ;;  %v2257_v34 = vpop.permute.xlu0 %2256  ;;  %v2259_v55 = vpop.permute.xlu1 %2258 }
 0x24e   :  { %v2289_v22 = vsel %vm2278_vm1, %v2255_v9, %v2257_v34  ;;  %v2288_v1 = vsel %vm2278_vm1, %v2257_v34, %v2259_v55 }
 0x24f   :  { %2345 = vst [vmem:[%s4381_s4 + $0x30] sm:$0xff] %v2325_v0  ;;  %2346 = vst [vmem:[%s4381_s4 + $0x38] sm:$0xff] %v2326_v15  ;;  %v2307_v61 = vmax.f32 %v4168_v59, %v2289_v22  ;;  %v2308_v50 = vmax.f32 %v4179_v14, %v2288_v1 }
 0x251   :  { %v2327_v6 = vmax.f32 %v2307_v61, 0.0  ;;  %v2328_v48 = vmax.f32 %v2308_v50, 0.0  ;;  %v2261_v58 = vpop.permute.xlu0 %2260  ;;  %v2263_v28 = vpop.permute.xlu1 %2262 }
 0x252   :  { %v2287_v63 = vsel %vm2278_vm1, %v2259_v55, %v2261_v58  ;;  %v2286_v20 = vsel %vm2278_vm1, %v2261_v58, %v2263_v28 }
 0x253   :  { %2347 = vst [vmem:[%s4381_s4 + $0x40] sm:$0xff] %v2327_v6  ;;  %2348 = vst [vmem:[%s4381_s4 + $0x48] sm:$0xff] %v2328_v48  ;;  %v2309_v59 = vmax.f32 %v4182_v53, %v2287_v63  ;;  %v2310_v14 = vmax.f32 %v4193_v12, %v2286_v20 }
 0x255   :  { %v2329_v42 = vmax.f32 %v2309_v59, 0.0  ;;  %v2330_v2 = vmax.f32 %v2310_v14, 0.0  ;;  %v2265_v23 = vpop.permute.xlu0 %2264  ;;  %v2267_v37 = vpop.permute.xlu1 %2266 }
 0x256   :  { %v2285_v54 = vsel %vm2278_vm1, %v2263_v28, %v2265_v23  ;;  %v2284_v38 = vsel %vm2278_vm1, %v2265_v23, %v2267_v37 }
 0x257   :  { %2349 = vst [vmem:[%s4381_s4 + $0x50] sm:$0xff] %v2329_v42  ;;  %2350 = vst [vmem:[%s4381_s4 + $0x58] sm:$0xff] %v2330_v2  ;;  %v2311_v53 = vmax.f32 %v4196_v36, %v2285_v54  ;;  %v2312_v12 = vmax.f32 %v4207_v5, %v2284_v38 }
 0x259   :  { %v2331_v49 = vmax.f32 %v2311_v53, 0.0  ;;  %v2332_v21 = vmax.f32 %v2312_v12, 0.0  ;;  %v2269_v40 = vpop.permute.xlu0 %2268  ;;  %v2271_v44 = vpop.permute.xlu1 %2270 }
 0x25a   :  { %v2283_v46 = vsel %vm2278_vm1, %v2267_v37, %v2269_v40  ;;  %v2282_v39 = vsel %vm2278_vm1, %v2269_v40, %v2271_v44 }
 0x25b   :  { %2351 = vst [vmem:[%s4381_s4 + $0x60] sm:$0xff] %v2331_v49  ;;  %2352 = vst [vmem:[%s4381_s4 + $0x68] sm:$0xff] %v2332_v21  ;;  %v2313_v36 = vmax.f32 %v4210_v30, %v2283_v46  ;;  %v2314_v5 = vmax.f32 %v4221_v31, %v2282_v39 }
 0x25d   :  { %v2333_v24 = vmax.f32 %v2313_v36, 0.0  ;;  %v2334_v18 = vmax.f32 %v2314_v5, 0.0  ;;  %v2273_v35 = vpop.permute.xlu0 %2272  ;;  %v2275_v32 = vpop.permute.xlu1 %2274 }
 0x25e   :  { %v2281_v41 = vsel %vm2278_vm1, %v2271_v44, %v2273_v35  ;;  %v2280_v16 = vsel %vm2278_vm1, %v2273_v35, %v2275_v32 }
 0x25f   :  { %2353 = vst [vmem:[%s4381_s4 + $0x70] sm:$0xff] %v2333_v24  ;;  %2354 = vst [vmem:[%s4381_s4 + $0x78] sm:$0xff] %v2334_v18  ;;  %v2315_v30 = vmax.f32 %v4224_v8, %v2281_v41  ;;  %v2316_v31 = vmax.f32 %v4235_v7, %v2280_v16 }
 0x261   :  { %v2335_v43 = vmax.f32 %v2315_v30, 0.0  ;;  %v2336_v19 = vmax.f32 %v2316_v31, 0.0  ;;  %v2277_v45 = vpop.permute.xlu0 %2276 }
 0x262   :  { %v2279_v60 = vsel %vm2278_vm1, %v2275_v32, %v2277_v45  ;;  %v2298_v27 = vsel %vm2278_vm1, %v2277_v45, %v4252_v47 }
 0x263   :  { %2355 = vst [vmem:[%s4381_s4 + $0x80] sm:$0xff] %v2335_v43  ;;  %2356 = vst [vmem:[%s4381_s4 + $0x88] sm:$0xff] %v2336_v19  ;;  %v2317_v8 = vmax.f32 %v4238_v17, %v2279_v60  ;;  %v2318_v7 = vmax.f32 %v4248_v33, %v2298_v27 }
 0x265   :  { %v2337_v29 = vmax.f32 %v2317_v8, 0.0  ;;  %v2338_v52 = vmax.f32 %v2318_v7, 0.0 }
 0x267   :  { %2357 = vst [vmem:[%s4381_s4 + $0x90] sm:$0xff] %v2337_v29  ;;  %2358 = vst [vmem:[%s4381_s4 + $0x98] sm:$0xff] %v2338_v52 }

</bundles_post_ra>
